<compile_context>
chip_gen: v6e
topology: v6e:2x2x1
jax: 0.10.0
libtpu: 0.0.40
codegen_flags: <defaults>
</compile_context>

<pallas_src>
import functools

import jax
import jax.numpy as jnp
from jax.experimental import pallas as pl
from jax.experimental.pallas import tpu as pltpu

NEG_SLOPE = 0.01   # nn.LeakyReLU default
BN_EPS = 1e-5      # nn.BatchNorm1d default


def _leaky_relu(x):
    return jnp.where(x >= 0, x, NEG_SLOPE * x)


def _round_up(a, b):
    return (a + b - 1) // b * b


def _disc_kernel(x_ref, w1_ref, w2_ref, w3_ref, p1_ref, p2_ref, b3_ref,
                 out_ref, s1_ref, s2_ref, *, n_true):
    """3-pass forward.  s1/s2 hold [sum; sum_sq] while their stats pass runs and
    are overwritten in place with [scale; shift] when that pass finalizes."""
    p = pl.program_id(0)          # 0: layer-1 stats, 1: layer-2 stats, 2: emit
    t = pl.program_id(1)          # batch tile
    nt = pl.num_programs(1)
    inv_n = 1.0 / float(n_true)
    tm = x_ref.shape[0]

    # h1 (pre-BN layer 1) is needed in every pass; bias b1 is omitted because
    # training-mode BN subtracts the batch mean, which cancels it exactly.
    h1 = jnp.dot(x_ref[...], w1_ref[...], preferred_element_type=jnp.float32)

    # ---- pass 0: layer-1 batch statistics -----------------------------------
    @pl.when(jnp.logical_and(p == 0, t == 0))
    def _():
        s1_ref[...] = jnp.zeros_like(s1_ref)

    @pl.when(p == 0)
    def _():
        # Zero-padded batch rows give h1 == 0 (no bias), so they add nothing.
        s1_ref[0:1, :] = s1_ref[0:1, :] + jnp.sum(h1, axis=0, keepdims=True)
        s1_ref[1:2, :] = s1_ref[1:2, :] + jnp.sum(h1 * h1, axis=0, keepdims=True)

    @pl.when(jnp.logical_and(p == 0, t == nt - 1))
    def _():
        mean = s1_ref[0:1, :] * inv_n
        var = s1_ref[1:2, :] * inv_n - mean * mean
        scale = p1_ref[0:1, :] * jax.lax.rsqrt(var + BN_EPS)      # gamma1 / std
        s1_ref[0:1, :] = scale
        s1_ref[1:2, :] = p1_ref[1:2, :] - mean * scale            # beta1 - mean*scale

    # ---- pass 1: layer-2 batch statistics -----------------------------------
    @pl.when(jnp.logical_and(p == 1, t == 0))
    def _():
        s2_ref[...] = jnp.zeros_like(s2_ref)

    @pl.when(p == 1)
    def _():
        a1 = _leaky_relu(h1 * s1_ref[0:1, :] + s1_ref[1:2, :])
        # Mask padded rows: their a1 = LeakyReLU(shift1) != 0 and must not
        # pollute the layer-2 statistics.
        row = jax.lax.broadcasted_iota(jnp.int32, (tm, 1), 0) + t * tm
        a1 = jnp.where(row < n_true, a1, 0.0)
        h2 = jnp.dot(a1.astype(w2_ref.dtype), w2_ref[...],
                     preferred_element_type=jnp.float32)
        s2_ref[0:1, :] = s2_ref[0:1, :] + jnp.sum(h2, axis=0, keepdims=True)
        s2_ref[1:2, :] = s2_ref[1:2, :] + jnp.sum(h2 * h2, axis=0, keepdims=True)

    @pl.when(jnp.logical_and(p == 1, t == nt - 1))
    def _():
        mean = s2_ref[0:1, :] * inv_n
        var = s2_ref[1:2, :] * inv_n - mean * mean
        scale = p2_ref[0:1, :] * jax.lax.rsqrt(var + BN_EPS)
        s2_ref[0:1, :] = scale
        s2_ref[1:2, :] = p2_ref[1:2, :] - mean * scale

    # ---- output --------------------------------------------------------------
    @pl.when(p != 2)
    def _():
        out_ref[...] = jnp.zeros_like(out_ref)    # deterministic pre-final writeback

    @pl.when(p == 2)
    def _():
        a1 = _leaky_relu(h1 * s1_ref[0:1, :] + s1_ref[1:2, :])
        h2 = jnp.dot(a1.astype(w2_ref.dtype), w2_ref[...],
                     preferred_element_type=jnp.float32)
        a2 = _leaky_relu(h2 * s2_ref[0:1, :] + s2_ref[1:2, :])
        out_ref[...] = (jnp.dot(a2.astype(w3_ref.dtype), w3_ref[...],
                                preferred_element_type=jnp.float32)
                        + b3_ref[...])


def census_region_discriminator(x, params, alpha, *, block_rows=512):
    """Forward pass.  `alpha` only scales gradients in the PyTorch backward;
    forward is identity, so it is unused here."""
    del alpha  # gradient reversal is identity in forward
    n, d = x.shape

    # Batch tile: multiple of 16 rows (bf16 sublane packing), capped so that the
    # double-buffered tiles stay far below every generation's scoped VMEM.
    tm = max(16, min(block_rows, _round_up(n, 16)))
    tm = _round_up(tm, 16)
    n_pad = _round_up(n, tm)
    num_tiles = n_pad // tm

    # bf16 MXU inputs (f32 accumulation inside the kernel); stats stay f32.
    x_p = jnp.pad(x.astype(jnp.bfloat16), ((0, n_pad - n), (0, 0)))
    w1 = params["w1"].astype(jnp.bfloat16)                          # (d, 24)
    w2 = params["w2"].astype(jnp.bfloat16)                          # (24, 10)
    w3 = params["w3"].astype(jnp.bfloat16)                          # (10, 2)
    # b1/b2 are intentionally dropped: training-mode BatchNorm cancels them.
    p1 = jnp.concatenate([params["gamma1"], params["beta1"]], 0)    # (2, 24)
    p2 = jnp.concatenate([params["gamma2"], params["beta2"]], 0)    # (2, 10)
    b3 = params["b3"].reshape(1, 2).astype(jnp.float32)

    kernel = functools.partial(_disc_kernel, n_true=n)

    # TODO(synk): marking the tile axis "parallel" (v7x megacore) would require
    # hoisting/reducing the BN statistics across cores; kept "arbitrary" so the
    # per-core scratch accumulators see the full batch.
    out = pl.pallas_call(
        kernel,
        out_shape=jax.ShapeDtypeStruct((n_pad, 2), jnp.float32),
        grid_spec=pltpu.PrefetchScalarGridSpec(
            num_scalar_prefetch=0,
            grid=(3, num_tiles),
            in_specs=[
                pl.BlockSpec((tm, d), lambda p, t: (t, 0)),      # x tile (pipelined)
                pl.BlockSpec((d, 24), lambda p, t: (0, 0)),      # W1 (resident)
                pl.BlockSpec((24, 10), lambda p, t: (0, 0)),     # W2 (resident)
                pl.BlockSpec((10, 2), lambda p, t: (0, 0)),      # W3 (resident)
                pl.BlockSpec((2, 24), lambda p, t: (0, 0)),      # [gamma1; beta1]
                pl.BlockSpec((2, 10), lambda p, t: (0, 0)),      # [gamma2; beta2]
                pl.BlockSpec((1, 2), lambda p, t: (0, 0)),       # b3
            ],
            out_specs=pl.BlockSpec((tm, 2), lambda p, t: (t, 0)),
            scratch_shapes=[pltpu.VMEM((2, 24), jnp.float32),    # layer-1 stats/scale-shift
                            pltpu.VMEM((2, 10), jnp.float32)],   # layer-2 stats/scale-shift
        ),
        compiler_params=pltpu.CompilerParams(
            dimension_semantics=("arbitrary", "arbitrary"),
            vmem_limit_bytes=32 * 1024 * 1024,
        ),
    )(x_p, w1, w2, w3, p1, p2, b3)
    # TODO(synk): the (N, 2) logit output is lane-sparse (2 of 128 lanes); a
    # consumer that accepts a stacked/padded layout would get denser stores.
    return out[:n]


def init_params(key, input_dim):
    """Deterministic parameter init mirroring the module's shapes."""
    k1, k2, k3, k4, k5, k6 = jax.random.split(key, 6)

    def linear_init(kw, kb, fan_in, fan_out):
        bound = 1.0 / jnp.sqrt(jnp.float32(fan_in))
        w = jax.random.uniform(kw, (fan_out, fan_in), jnp.float32, -bound, bound)
        b = jax.random.uniform(kb, (fan_out,), jnp.float32, -bound, bound)
        return w, b

    w1, b1 = linear_init(k1, k2, input_dim, 24)
    w2, b2 = linear_init(k3, k4, 24, 10)
    w3, b3 = linear_init(k5, k6, 10, 2)

    # Spectral normalization of the first linear layer's weight (plain-JAX glue).
    # TODO(synk): PyTorch uses a persistent 1-step power iteration; exact largest
    # singular value (SVD) is used here instead.
    sigma = jnp.linalg.svd(w1, compute_uv=False)[0]
    w1 = w1 / sigma

    return dict(
        w1=w1.T, b1=b1.reshape(1, -1),   # b1 unused in forward (BN cancels it)
        w2=w2.T, b2=b2.reshape(1, -1),   # b2 unused in forward (BN cancels it)
        w3=w3.T, b3=b3.reshape(1, -1),
        gamma1=jnp.ones((1, 24), jnp.float32), beta1=jnp.zeros((1, 24), jnp.float32),
        gamma2=jnp.ones((1, 10), jnp.float32), beta2=jnp.zeros((1, 10), jnp.float32),
    )


def reference_forward(x, params):
    """Pure-JAX reference mirroring the kernel's math (bf16 MXU inputs, f32 stats,
    biases b1/b2 included to confirm they cancel under training-mode BN)."""
    def bf(z):
        return z.astype(jnp.bfloat16).astype(jnp.float32)

    def bn(h, gamma, beta):
        m = jnp.mean(h, axis=0, keepdims=True)
        v = jnp.mean(h * h, axis=0, keepdims=True) - m * m
        return (h - m) * jax.lax.rsqrt(v + BN_EPS) * gamma + beta

    h1 = bf(x) @ bf(params["w1"]) + params["b1"]
    a1 = _leaky_relu(bn(h1, params["gamma1"], params["beta1"]))
    h2 = bf(a1) @ bf(params["w2"]) + params["b2"]
    a2 = _leaky_relu(bn(h2, params["gamma2"], params["beta2"]))
    return bf(a2) @ bf(params["w3"]) + params["b3"]


if __name__ == "__main__":
    key = jax.random.PRNGKey(0)
    k_x, k_p = jax.random.split(key)

    batch = 200          # deliberately not a multiple of the 128-row tile:
    input_dim = 32       # exercises multi-tile pipelining + padded-row masking

    x = jax.random.normal(k_x, (batch, input_dim), dtype=jnp.float32)
    params = init_params(k_p, input_dim)

    out = census_region_discriminator(x, params, alpha=1.0, block_rows=128)
    out = jax.block_until_ready(out)

    assert out.shape == (batch, 2), out.shape
    assert out.dtype == jnp.float32
    assert bool(jnp.all(jnp.isfinite(out)))

    ref = reference_forward(x, params)
    err = float(jnp.max(jnp.abs(out - ref)))
    assert err < 1e-2, f"max abs error vs reference: {err}"
    print("KERNEL_OK")
</pallas_src>

<mosaic_0001>
module attributes {stable_mosaic.version = 11 : i64} {
  func.func @_disc_kernel(%arg0: i32, %arg1: i32, %arg2: memref<128x32xbf16, #tpu.memory_space<vmem>>, %arg3: memref<32x24xbf16, #tpu.memory_space<vmem>>, %arg4: memref<24x10xbf16, #tpu.memory_space<vmem>>, %arg5: memref<10x2xbf16, #tpu.memory_space<vmem>>, %arg6: memref<2x24xf32, #tpu.memory_space<vmem>>, %arg7: memref<2x10xf32, #tpu.memory_space<vmem>>, %arg8: memref<1x2xf32, #tpu.memory_space<vmem>>, %arg9: memref<128x2xf32, #tpu.memory_space<vmem>>, %arg10: memref<2x24xf32, #tpu.memory_space<vmem>>, %arg11: memref<2x10xf32, #tpu.memory_space<vmem>>) attributes {dimension_semantics = [#tpu.dimension_semantics<arbitrary>, #tpu.dimension_semantics<arbitrary>], iteration_bounds = array<i64: 3, 2>, scalar_prefetch = 0 : i64, scratch_operands = 2 : i64, tpu.core_type = #tpu.core_type<tc>, window_params = [{transform_indices = @transform_0, window_bounds = array<i64: 128, 32>}, {pipeline_mode = #tpu.pipeline_mode<synchronous>, transform_indices = @transform_1, window_bounds = array<i64: 32, 24>}, {pipeline_mode = #tpu.pipeline_mode<synchronous>, transform_indices = @transform_2, window_bounds = array<i64: 24, 10>}, {pipeline_mode = #tpu.pipeline_mode<synchronous>, transform_indices = @transform_3, window_bounds = array<i64: 10, 2>}, {pipeline_mode = #tpu.pipeline_mode<synchronous>, transform_indices = @transform_4, window_bounds = array<i64: 2, 24>}, {pipeline_mode = #tpu.pipeline_mode<synchronous>, transform_indices = @transform_5, window_bounds = array<i64: 2, 10>}, {pipeline_mode = #tpu.pipeline_mode<synchronous>, transform_indices = @transform_6, window_bounds = array<i64: 1, 2>}, {transform_indices = @transform_7, window_bounds = array<i64: 128, 2>}]} {
    %c0 = arith.constant 0 : index
    %c0_0 = arith.constant 0 : index
    %0 = vector.load %arg2[%c0, %c0_0] : memref<128x32xbf16, #tpu.memory_space<vmem>>, vector<128x32xbf16>
    %c0_1 = arith.constant 0 : index
    %c0_2 = arith.constant 0 : index
    %1 = vector.load %arg3[%c0_1, %c0_2] : memref<32x24xbf16, #tpu.memory_space<vmem>>, vector<32x24xbf16>
    %cst = arith.constant dense<0.000000e+00> : vector<128x24xf32>
    %2 = tpu.matmul %0, %1, %cst {dimension_numbers = #tpu.dot_dimension_numbers<[1], [0], [0], [1], [0, 0, 1, 1], [], []>} : vector<128x32xbf16>, vector<32x24xbf16>, vector<128x24xf32> -> vector<128x24xf32>
    %c0_i32 = arith.constant 0 : i32
    %3 = arith.cmpi eq, %arg0, %c0_i32 : i32
    %c0_i32_3 = arith.constant 0 : i32
    %4 = arith.cmpi eq, %arg1, %c0_i32_3 : i32
    %5 = arith.andi %3, %4 : i1
    %6 = arith.extui %5 : i1 to i32
    %c0_i32_4 = arith.constant 0 : i32
    %7 = arith.cmpi ne, %6, %c0_i32_4 : i32
    scf.if %7 {
      %cst_20 = arith.constant 0.000000e+00 : f32
      %35 = vector.broadcast %cst_20 : f32 to vector<2x24xf32>
      %c0_21 = arith.constant 0 : index
      %c0_22 = arith.constant 0 : index
      %36 = vector.load %arg10[%c0_21, %c0_22] : memref<2x24xf32, #tpu.memory_space<vmem>>, vector<2x24xf32>
      tpu.vector_store %arg10[%c0_21, %c0_22], %35 {strides = array<i32>} : memref<2x24xf32, #tpu.memory_space<vmem>>, vector<2x24xf32>,
    } else {
    }
    %c0_i32_5 = arith.constant 0 : i32
    %8 = arith.cmpi eq, %arg0, %c0_i32_5 : i32
    %9 = arith.extui %8 : i1 to i32
    %c0_i32_6 = arith.constant 0 : i32
    %10 = arith.cmpi ne, %9, %c0_i32_6 : i32
    scf.if %10 {
      %c0_20 = arith.constant 0 : index
      %c0_21 = arith.constant 0 : index
      %35 = vector.load %arg10[%c0_20, %c0_21] : memref<2x24xf32, #tpu.memory_space<vmem>>, vector<1x24xf32>
      %cst_22 = arith.constant dense<0.000000e+00> : vector<24xf32>
      %36 = vector.multi_reduction <add>, %2, %cst_22 [0] : vector<128x24xf32> to vector<24xf32>
      %37 = vector.shape_cast %36 : vector<24xf32> to vector<1x24xf32>
      %38 = arith.addf %35, %37 : vector<1x24xf32>
      %c0_23 = arith.constant 0 : index
      %c0_24 = arith.constant 0 : index
      %39 = vector.load %arg10[%c0_23, %c0_24] : memref<2x24xf32, #tpu.memory_space<vmem>>, vector<1x24xf32>
      tpu.vector_store %arg10[%c0_23, %c0_24], %38 {strides = array<i32>} : memref<2x24xf32, #tpu.memory_space<vmem>>, vector<1x24xf32>,
      %c1 = arith.constant 1 : index
      %c0_25 = arith.constant 0 : index
      %40 = vector.load %arg10[%c1, %c0_25] : memref<2x24xf32, #tpu.memory_space<vmem>>, vector<1x24xf32>
      %41 = arith.mulf %2, %2 : vector<128x24xf32>
      %cst_26 = arith.constant dense<0.000000e+00> : vector<24xf32>
      %42 = vector.multi_reduction <add>, %41, %cst_26 [0] : vector<128x24xf32> to vector<24xf32>
      %43 = vector.shape_cast %42 : vector<24xf32> to vector<1x24xf32>
      %44 = arith.addf %40, %43 : vector<1x24xf32>
      %c1_27 = arith.constant 1 : index
      %c0_28 = arith.constant 0 : index
      %45 = vector.load %arg10[%c1_27, %c0_28] : memref<2x24xf32, #tpu.memory_space<vmem>>, vector<1x24xf32>
      tpu.vector_store %arg10[%c1_27, %c0_28], %44 {strides = array<i32>} : memref<2x24xf32, #tpu.memory_space<vmem>>, vector<1x24xf32>,
    } else {
    }
    %c0_i32_7 = arith.constant 0 : i32
    %11 = arith.cmpi eq, %arg0, %c0_i32_7 : i32
    %c1_i32 = arith.constant 1 : i32
    %12 = arith.cmpi eq, %arg1, %c1_i32 : i32
    %13 = arith.andi %11, %12 : i1
    %14 = arith.extui %13 : i1 to i32
    %c0_i32_8 = arith.constant 0 : i32
    %15 = arith.cmpi ne, %14, %c0_i32_8 : i32
    scf.if %15 {
      %c0_20 = arith.constant 0 : index
      %c0_21 = arith.constant 0 : index
      %35 = vector.load %arg10[%c0_20, %c0_21] : memref<2x24xf32, #tpu.memory_space<vmem>>, vector<1x24xf32>
      %cst_22 = arith.constant 5.000000e-03 : f32
      %36 = vector.broadcast %cst_22 : f32 to vector<1x24xf32>
      %37 = arith.mulf %35, %36 : vector<1x24xf32>
      %c1 = arith.constant 1 : index
      %c0_23 = arith.constant 0 : index
      %38 = vector.load %arg10[%c1, %c0_23] : memref<2x24xf32, #tpu.memory_space<vmem>>, vector<1x24xf32>
      %cst_24 = arith.constant 5.000000e-03 : f32
      %39 = vector.broadcast %cst_24 : f32 to vector<1x24xf32>
      %40 = arith.mulf %38, %39 : vector<1x24xf32>
      %41 = arith.mulf %37, %37 : vector<1x24xf32>
      %42 = arith.subf %40, %41 : vector<1x24xf32>
      %c0_25 = arith.constant 0 : index
      %c0_26 = arith.constant 0 : index
      %43 = vector.load %arg6[%c0_25, %c0_26] : memref<2x24xf32, #tpu.memory_space<vmem>>, vector<1x24xf32>
      %cst_27 = arith.constant 9.99999974E-6 : f32
      %44 = vector.broadcast %cst_27 : f32 to vector<1x24xf32>
      %45 = arith.addf %42, %44 : vector<1x24xf32>
      %46 = math.rsqrt %45 : vector<1x24xf32>
      %47 = arith.mulf %43, %46 : vector<1x24xf32>
      %c0_28 = arith.constant 0 : index
      %c0_29 = arith.constant 0 : index
      %48 = vector.load %arg10[%c0_28, %c0_29] : memref<2x24xf32, #tpu.memory_space<vmem>>, vector<1x24xf32>
      tpu.vector_store %arg10[%c0_28, %c0_29], %47 {strides = array<i32>} : memref<2x24xf32, #tpu.memory_space<vmem>>, vector<1x24xf32>,
      %c1_30 = arith.constant 1 : index
      %c0_31 = arith.constant 0 : index
      %49 = vector.load %arg6[%c1_30, %c0_31] : memref<2x24xf32, #tpu.memory_space<vmem>>, vector<1x24xf32>
      %50 = arith.mulf %37, %47 : vector<1x24xf32>
      %51 = arith.subf %49, %50 : vector<1x24xf32>
      %c1_32 = arith.constant 1 : index
      %c0_33 = arith.constant 0 : index
      %52 = vector.load %arg10[%c1_32, %c0_33] : memref<2x24xf32, #tpu.memory_space<vmem>>, vector<1x24xf32>
      tpu.vector_store %arg10[%c1_32, %c0_33], %51 {strides = array<i32>} : memref<2x24xf32, #tpu.memory_space<vmem>>, vector<1x24xf32>,
    } else {
    }
    %c1_i32_9 = arith.constant 1 : i32
    %16 = arith.cmpi eq, %arg0, %c1_i32_9 : i32
    %c0_i32_10 = arith.constant 0 : i32
    %17 = arith.cmpi eq, %arg1, %c0_i32_10 : i32
    %18 = arith.andi %16, %17 : i1
    %19 = arith.extui %18 : i1 to i32
    %c0_i32_11 = arith.constant 0 : i32
    %20 = arith.cmpi ne, %19, %c0_i32_11 : i32
    scf.if %20 {
      %cst_20 = arith.constant 0.000000e+00 : f32
      %35 = vector.broadcast %cst_20 : f32 to vector<2x10xf32>
      %c0_21 = arith.constant 0 : index
      %c0_22 = arith.constant 0 : index
      %36 = vector.load %arg11[%c0_21, %c0_22] : memref<2x10xf32, #tpu.memory_space<vmem>>, vector<2x10xf32>
      tpu.vector_store %arg11[%c0_21, %c0_22], %35 {strides = array<i32>} : memref<2x10xf32, #tpu.memory_space<vmem>>, vector<2x10xf32>,
    } else {
    }
    %c1_i32_12 = arith.constant 1 : i32
    %21 = arith.cmpi eq, %arg0, %c1_i32_12 : i32
    %22 = arith.extui %21 : i1 to i32
    %c0_i32_13 = arith.constant 0 : i32
    %23 = arith.cmpi ne, %22, %c0_i32_13 : i32
    scf.if %23 {
      %c0_20 = arith.constant 0 : index
      %c0_21 = arith.constant 0 : index
      %35 = vector.load %arg10[%c0_20, %c0_21] : memref<2x24xf32, #tpu.memory_space<vmem>>, vector<1x24xf32>
      %36 = vector.broadcast %35 : vector<1x24xf32> to vector<128x24xf32>
      %37 = arith.mulf %2, %36 : vector<128x24xf32>
      %c1 = arith.constant 1 : index
      %c0_22 = arith.constant 0 : index
      %38 = vector.load %arg10[%c1, %c0_22] : memref<2x24xf32, #tpu.memory_space<vmem>>, vector<1x24xf32>
      %39 = vector.broadcast %38 : vector<1x24xf32> to vector<128x24xf32>
      %40 = arith.addf %37, %39 : vector<128x24xf32>
      %cst_23 = arith.constant 0.000000e+00 : f32
      %41 = vector.broadcast %cst_23 : f32 to vector<128x24xf32>
      %42 = arith.cmpf oge, %40, %41 : vector<128x24xf32>
      %cst_24 = arith.constant 0.00999999977 : f32
      %43 = vector.broadcast %cst_24 : f32 to vector<128x24xf32>
      %44 = arith.mulf %43, %40 : vector<128x24xf32>
      %45 = arith.select %42, %40, %44 : vector<128x24xi1>, vector<128x24xf32>
      %46 = tpu.iota {dimensions = array<i32: 0>} : vector<128x1xi32>
      %c128_i32 = arith.constant 128 : i32
      %47 = arith.muli %arg1, %c128_i32 : i32
      %48 = vector.broadcast %47 : i32 to vector<128x1xi32>
      %49 = arith.addi %46, %48 : vector<128x1xi32>
      %c200_i32 = arith.constant 200 : i32
      %50 = vector.broadcast %c200_i32 : i32 to vector<128x1xi32>
      %51 = arith.cmpi slt, %49, %50 : vector<128x1xi32>
      %cst_25 = arith.constant 0.000000e+00 : f32
      %52 = vector.shape_cast %51 : vector<128x1xi1> to vector<128x1xi1>
      %53 = vector.broadcast %52 : vector<128x1xi1> to vector<128x24xi1>
      %54 = vector.broadcast %cst_25 : f32 to vector<128x24xf32>
      %55 = arith.select %53, %45, %54 : vector<128x24xi1>, vector<128x24xf32>
      %56 = arith.truncf %55 : vector<128x24xf32> to vector<128x24xbf16>
      %c0_26 = arith.constant 0 : index
      %c0_27 = arith.constant 0 : index
      %57 = vector.load %arg4[%c0_26, %c0_27] : memref<24x10xbf16, #tpu.memory_space<vmem>>, vector<24x10xbf16>
      %cst_28 = arith.constant dense<0.000000e+00> : vector<128x10xf32>
      %58 = tpu.matmul %56, %57, %cst_28 {dimension_numbers = #tpu.dot_dimension_numbers<[1], [0], [0], [1], [0, 0, 1, 1], [], []>} : vector<128x24xbf16>, vector<24x10xbf16>, vector<128x10xf32> -> vector<128x10xf32>
      %c0_29 = arith.constant 0 : index
      %c0_30 = arith.constant 0 : index
      %59 = vector.load %arg11[%c0_29, %c0_30] : memref<2x10xf32, #tpu.memory_space<vmem>>, vector<1x10xf32>
      %cst_31 = arith.constant dense<0.000000e+00> : vector<10xf32>
      %60 = vector.multi_reduction <add>, %58, %cst_31 [0] : vector<128x10xf32> to vector<10xf32>
      %61 = vector.shape_cast %60 : vector<10xf32> to vector<1x10xf32>
      %62 = arith.addf %59, %61 : vector<1x10xf32>
      %c0_32 = arith.constant 0 : index
      %c0_33 = arith.constant 0 : index
      %63 = vector.load %arg11[%c0_32, %c0_33] : memref<2x10xf32, #tpu.memory_space<vmem>>, vector<1x10xf32>
      tpu.vector_store %arg11[%c0_32, %c0_33], %62 {strides = array<i32>} : memref<2x10xf32, #tpu.memory_space<vmem>>, vector<1x10xf32>,
      %c1_34 = arith.constant 1 : index
      %c0_35 = arith.constant 0 : index
      %64 = vector.load %arg11[%c1_34, %c0_35] : memref<2x10xf32, #tpu.memory_space<vmem>>, vector<1x10xf32>
      %65 = arith.mulf %58, %58 : vector<128x10xf32>
      %cst_36 = arith.constant dense<0.000000e+00> : vector<10xf32>
      %66 = vector.multi_reduction <add>, %65, %cst_36 [0] : vector<128x10xf32> to vector<10xf32>
      %67 = vector.shape_cast %66 : vector<10xf32> to vector<1x10xf32>
      %68 = arith.addf %64, %67 : vector<1x10xf32>
      %c1_37 = arith.constant 1 : index
      %c0_38 = arith.constant 0 : index
      %69 = vector.load %arg11[%c1_37, %c0_38] : memref<2x10xf32, #tpu.memory_space<vmem>>, vector<1x10xf32>
      tpu.vector_store %arg11[%c1_37, %c0_38], %68 {strides = array<i32>} : memref<2x10xf32, #tpu.memory_space<vmem>>, vector<1x10xf32>,
    } else {
    }
    %c1_i32_14 = arith.constant 1 : i32
    %24 = arith.cmpi eq, %arg0, %c1_i32_14 : i32
    %c1_i32_15 = arith.constant 1 : i32
    %25 = arith.cmpi eq, %arg1, %c1_i32_15 : i32
    %26 = arith.andi %24, %25 : i1
    %27 = arith.extui %26 : i1 to i32
    %c0_i32_16 = arith.constant 0 : i32
    %28 = arith.cmpi ne, %27, %c0_i32_16 : i32
    scf.if %28 {
      %c0_20 = arith.constant 0 : index
      %c0_21 = arith.constant 0 : index
      %35 = vector.load %arg11[%c0_20, %c0_21] : memref<2x10xf32, #tpu.memory_space<vmem>>, vector<1x10xf32>
      %cst_22 = arith.constant 5.000000e-03 : f32
      %36 = vector.broadcast %cst_22 : f32 to vector<1x10xf32>
      %37 = arith.mulf %35, %36 : vector<1x10xf32>
      %c1 = arith.constant 1 : index
      %c0_23 = arith.constant 0 : index
      %38 = vector.load %arg11[%c1, %c0_23] : memref<2x10xf32, #tpu.memory_space<vmem>>, vector<1x10xf32>
      %cst_24 = arith.constant 5.000000e-03 : f32
      %39 = vector.broadcast %cst_24 : f32 to vector<1x10xf32>
      %40 = arith.mulf %38, %39 : vector<1x10xf32>
      %41 = arith.mulf %37, %37 : vector<1x10xf32>
      %42 = arith.subf %40, %41 : vector<1x10xf32>
      %c0_25 = arith.constant 0 : index
      %c0_26 = arith.constant 0 : index
      %43 = vector.load %arg7[%c0_25, %c0_26] : memref<2x10xf32, #tpu.memory_space<vmem>>, vector<1x10xf32>
      %cst_27 = arith.constant 9.99999974E-6 : f32
      %44 = vector.broadcast %cst_27 : f32 to vector<1x10xf32>
      %45 = arith.addf %42, %44 : vector<1x10xf32>
      %46 = math.rsqrt %45 : vector<1x10xf32>
      %47 = arith.mulf %43, %46 : vector<1x10xf32>
      %c0_28 = arith.constant 0 : index
      %c0_29 = arith.constant 0 : index
      %48 = vector.load %arg11[%c0_28, %c0_29] : memref<2x10xf32, #tpu.memory_space<vmem>>, vector<1x10xf32>
      tpu.vector_store %arg11[%c0_28, %c0_29], %47 {strides = array<i32>} : memref<2x10xf32, #tpu.memory_space<vmem>>, vector<1x10xf32>,
      %c1_30 = arith.constant 1 : index
      %c0_31 = arith.constant 0 : index
      %49 = vector.load %arg7[%c1_30, %c0_31] : memref<2x10xf32, #tpu.memory_space<vmem>>, vector<1x10xf32>
      %50 = arith.mulf %37, %47 : vector<1x10xf32>
      %51 = arith.subf %49, %50 : vector<1x10xf32>
      %c1_32 = arith.constant 1 : index
      %c0_33 = arith.constant 0 : index
      %52 = vector.load %arg11[%c1_32, %c0_33] : memref<2x10xf32, #tpu.memory_space<vmem>>, vector<1x10xf32>
      tpu.vector_store %arg11[%c1_32, %c0_33], %51 {strides = array<i32>} : memref<2x10xf32, #tpu.memory_space<vmem>>, vector<1x10xf32>,
    } else {
    }
    %c2_i32 = arith.constant 2 : i32
    %29 = arith.cmpi ne, %arg0, %c2_i32 : i32
    %30 = arith.extui %29 : i1 to i32
    %c0_i32_17 = arith.constant 0 : i32
    %31 = arith.cmpi ne, %30, %c0_i32_17 : i32
    scf.if %31 {
      %cst_20 = arith.constant 0.000000e+00 : f32
      %35 = vector.broadcast %cst_20 : f32 to vector<128x2xf32>
      %c0_21 = arith.constant 0 : index
      %c0_22 = arith.constant 0 : index
      %36 = vector.load %arg9[%c0_21, %c0_22] : memref<128x2xf32, #tpu.memory_space<vmem>>, vector<128x2xf32>
      tpu.vector_store %arg9[%c0_21, %c0_22], %35 {strides = array<i32>} : memref<128x2xf32, #tpu.memory_space<vmem>>, vector<128x2xf32>,
    } else {
    }
    %c2_i32_18 = arith.constant 2 : i32
    %32 = arith.cmpi eq, %arg0, %c2_i32_18 : i32
    %33 = arith.extui %32 : i1 to i32
    %c0_i32_19 = arith.constant 0 : i32
    %34 = arith.cmpi ne, %33, %c0_i32_19 : i32
    scf.if %34 {
      %c0_20 = arith.constant 0 : index
      %c0_21 = arith.constant 0 : index
      %35 = vector.load %arg10[%c0_20, %c0_21] : memref<2x24xf32, #tpu.memory_space<vmem>>, vector<1x24xf32>
      %36 = vector.broadcast %35 : vector<1x24xf32> to vector<128x24xf32>
      %37 = arith.mulf %2, %36 : vector<128x24xf32>
      %c1 = arith.constant 1 : index
      %c0_22 = arith.constant 0 : index
      %38 = vector.load %arg10[%c1, %c0_22] : memref<2x24xf32, #tpu.memory_space<vmem>>, vector<1x24xf32>
      %39 = vector.broadcast %38 : vector<1x24xf32> to vector<128x24xf32>
      %40 = arith.addf %37, %39 : vector<128x24xf32>
      %cst_23 = arith.constant 0.000000e+00 : f32
      %41 = vector.broadcast %cst_23 : f32 to vector<128x24xf32>
      %42 = arith.cmpf oge, %40, %41 : vector<128x24xf32>
      %cst_24 = arith.constant 0.00999999977 : f32
      %43 = vector.broadcast %cst_24 : f32 to vector<128x24xf32>
      %44 = arith.mulf %43, %40 : vector<128x24xf32>
      %45 = arith.select %42, %40, %44 : vector<128x24xi1>, vector<128x24xf32>
      %46 = arith.truncf %45 : vector<128x24xf32> to vector<128x24xbf16>
      %c0_25 = arith.constant 0 : index
      %c0_26 = arith.constant 0 : index
      %47 = vector.load %arg4[%c0_25, %c0_26] : memref<24x10xbf16, #tpu.memory_space<vmem>>, vector<24x10xbf16>
      %cst_27 = arith.constant dense<0.000000e+00> : vector<128x10xf32>
      %48 = tpu.matmul %46, %47, %cst_27 {dimension_numbers = #tpu.dot_dimension_numbers<[1], [0], [0], [1], [0, 0, 1, 1], [], []>} : vector<128x24xbf16>, vector<24x10xbf16>, vector<128x10xf32> -> vector<128x10xf32>
      %c0_28 = arith.constant 0 : index
      %c0_29 = arith.constant 0 : index
      %49 = vector.load %arg11[%c0_28, %c0_29] : memref<2x10xf32, #tpu.memory_space<vmem>>, vector<1x10xf32>
      %50 = vector.broadcast %49 : vector<1x10xf32> to vector<128x10xf32>
      %51 = arith.mulf %48, %50 : vector<128x10xf32>
      %c1_30 = arith.constant 1 : index
      %c0_31 = arith.constant 0 : index
      %52 = vector.load %arg11[%c1_30, %c0_31] : memref<2x10xf32, #tpu.memory_space<vmem>>, vector<1x10xf32>
      %53 = vector.broadcast %52 : vector<1x10xf32> to vector<128x10xf32>
      %54 = arith.addf %51, %53 : vector<128x10xf32>
      %cst_32 = arith.constant 0.000000e+00 : f32
      %55 = vector.broadcast %cst_32 : f32 to vector<128x10xf32>
      %56 = arith.cmpf oge, %54, %55 : vector<128x10xf32>
      %cst_33 = arith.constant 0.00999999977 : f32
      %57 = vector.broadcast %cst_33 : f32 to vector<128x10xf32>
      %58 = arith.mulf %57, %54 : vector<128x10xf32>
      %59 = arith.select %56, %54, %58 : vector<128x10xi1>, vector<128x10xf32>
      %60 = arith.truncf %59 : vector<128x10xf32> to vector<128x10xbf16>
      %c0_34 = arith.constant 0 : index
      %c0_35 = arith.constant 0 : index
      %61 = vector.load %arg5[%c0_34, %c0_35] : memref<10x2xbf16, #tpu.memory_space<vmem>>, vector<10x2xbf16>
      %cst_36 = arith.constant dense<0.000000e+00> : vector<128x2xf32>
      %62 = tpu.matmul %60, %61, %cst_36 {dimension_numbers = #tpu.dot_dimension_numbers<[1], [0], [0], [1], [0, 0, 1, 1], [], []>} : vector<128x10xbf16>, vector<10x2xbf16>, vector<128x2xf32> -> vector<128x2xf32>
      %c0_37 = arith.constant 0 : index
      %c0_38 = arith.constant 0 : index
      %63 = vector.load %arg8[%c0_37, %c0_38] : memref<1x2xf32, #tpu.memory_space<vmem>>, vector<1x2xf32>
      %64 = vector.broadcast %63 : vector<1x2xf32> to vector<128x2xf32>
      %65 = arith.addf %62, %64 : vector<128x2xf32>
      %c0_39 = arith.constant 0 : index
      %c0_40 = arith.constant 0 : index
      %66 = vector.load %arg9[%c0_39, %c0_40] : memref<128x2xf32, #tpu.memory_space<vmem>>, vector<128x2xf32>
      tpu.vector_store %arg9[%c0_39, %c0_40], %65 {strides = array<i32>} : memref<128x2xf32, #tpu.memory_space<vmem>>, vector<128x2xf32>,
    } else {
    }
    return
  }
  func.func @transform_0(%arg0: i32, %arg1: i32) -> (i32, i32) {
    %c0_i32 = arith.constant 0 : i32
    %c0_i32_0 = arith.constant 0 : i32
    return %arg1, %c0_i32 : i32, i32
  }
  func.func @transform_1(%arg0: i32, %arg1: i32) -> (i32, i32) {
    %c0_i32 = arith.constant 0 : i32
    %c0_i32_0 = arith.constant 0 : i32
    %c0_i32_1 = arith.constant 0 : i32
    return %c0_i32, %c0_i32_0 : i32, i32
  }
  func.func @transform_2(%arg0: i32, %arg1: i32) -> (i32, i32) {
    %c0_i32 = arith.constant 0 : i32
    %c0_i32_0 = arith.constant 0 : i32
    %c0_i32_1 = arith.constant 0 : i32
    return %c0_i32, %c0_i32_0 : i32, i32
  }
  func.func @transform_3(%arg0: i32, %arg1: i32) -> (i32, i32) {
    %c0_i32 = arith.constant 0 : i32
    %c0_i32_0 = arith.constant 0 : i32
    %c0_i32_1 = arith.constant 0 : i32
    return %c0_i32, %c0_i32_0 : i32, i32
  }
  func.func @transform_4(%arg0: i32, %arg1: i32) -> (i32, i32) {
    %c0_i32 = arith.constant 0 : i32
    %c0_i32_0 = arith.constant 0 : i32
    %c0_i32_1 = arith.constant 0 : i32
    return %c0_i32, %c0_i32_0 : i32, i32
  }
  func.func @transform_5(%arg0: i32, %arg1: i32) -> (i32, i32) {
    %c0_i32 = arith.constant 0 : i32
    %c0_i32_0 = arith.constant 0 : i32
    %c0_i32_1 = arith.constant 0 : i32
    return %c0_i32, %c0_i32_0 : i32, i32
  }
  func.func @transform_6(%arg0: i32, %arg1: i32) -> (i32, i32) {
    %c0_i32 = arith.constant 0 : i32
    %c0_i32_0 = arith.constant 0 : i32
    %c0_i32_1 = arith.constant 0 : i32
    return %c0_i32, %c0_i32_0 : i32, i32
  }
  func.func @transform_7(%arg0: i32, %arg1: i32) -> (i32, i32) {
    %c0_i32 = arith.constant 0 : i32
    %c0_i32_0 = arith.constant 0 : i32
    return %arg1, %c0_i32 : i32, i32
  }
}

</mosaic_0001>

<bundles_post_ra>
// kernel: tpu_custom_call.1
= control target key start
LH: loop header
LB: loop body
LE: loop exit
PB: predicated region body
PF: predicated region fallthrough
CT: control target
= control target key end

     0   :  { %s2010_s24 = smov 0   ;;  %s2012_s25 = smov 0   ;;  %s2551_s0 = inlined_call_operand.vmem [shape: bf16[256,32], index: 0, kind: input, shape index: {}]   ;;  %s2552_s1 = inlined_call_operand.vmem [shape: bf16[32,24], index: 1, kind: input, shape index: {}]   ;;  %s2553_s2 = inlined_call_operand.vmem [shape: bf16[24,10], index: 2, kind: input, shape index: {}]   ;;  %s2554_s3 = inlined_call_operand.vmem [shape: bf16[10,2], index: 3, kind: input, shape index: {}]   ;;  %s2555_s4 = inlined_call_operand.vmem [shape: f32[2,24], index: 4, kind: input, shape index: {}]   ;;  %s2556_s5 = inlined_call_operand.vmem [shape: f32[2,10], index: 5, kind: input, shape index: {}]   ;;  %s2557_s6 = inlined_call_operand.vmem [shape: f32[1,2], index: 6, kind: input, shape index: {}]   ;;  %s2558_s7 = inlined_call_operand.vmem [shape: f32[256,2], index: 7, kind: output, shape index: {}]  }
   0x1   :  { %s2014_s26 = smov 0   ;;  %s2016_s27 = smov 0  }
   0x2   :  { %s2018_s28 = smov 0  }
   0x3 LB: > { %s26_s29 = sadd.s32 1, %s1957_s26  ;;  %s29_s30 = sadd.s32 1, %s1961_s27  ;;  %s1965_s28 = sphi %s2018_s28, %s17_s28   ;;  %s1961_s27 = sphi %s2016_s27, %s2563_s27   ;;  %s1957_s26 = sphi %s2014_s26, %s2562_s26   ;;  %s1953_s25 = sphi %s2012_s25, %s2561_s25   ;;  %s1949_s24 = sphi %s2010_s24, %s2560_s24  }
   0x4   : > { %p27_p0 = scmp.ge.s32.totalorder %s26_s29, 2  ;;  %p1670_p1 = scmp.ge.s32.totalorder %s1965_s28, 1 }
   0x5   : > { %p250_p2 = scmp.lt.s32.totalorder %s1965_s28, 7 }
   0x6   : > { %s2565_s29 = smov (%p27_p0, %s26_s29), 0  ;;  %s2567_s30 = smov (!%p27_p0, %s29_s30), %s1961_s27 }
   0x7   : > { %p251_p3 = pnand %p1670_p1, %p250_p2  ;;  %p31_p4 = scmp.ge.s32.totalorder %s2567_s30, 3 }
   0x8   : > { %s1671_s10 = sshll.u32 (!%p251_p3), %s1949_s24, 4  ;;  %p489_p6 = scmp.eq.s32.totalorder (!%p251_p3), %s1953_s25, 0 }
   0x9   : > { %s2569_s30 = smov (%p31_p4, %s2567_s30), 0  ;;  %254 = sbr.rel (%p251_p3) target bundleno = 1119 (0x45f), region = 48 }
   0xa   : > { %p283_p5 = scmp.lt.s32.totalorder (!%p251_p3), %s1671_s10, 31  ;;  %p490_p7 = scmp.eq.s32.totalorder (!%p251_p3), %s1949_s24, 0 }
   0xc   : > { %p2073_p8 = pnand (!%p251_p3), %p490_p7, %p489_p6 }
   0xe   : > { %v1908_v0 = vld [vmem:[%s2552_s1 + $0x8] sm:$0xff]   ;;  %v1909_v1 = vld [vmem:[%s2552_s1] sm:$0xff]   ;;  %s2571_s10 = smov (!%p283_p5, %s1671_s10), 31  ;;  %vm367_vm0 = vcmask 261120  }
   0xf   : > { %1775 = vmatprep.subr.bf16.mxu0 %v1908_v0  ;;  %1853 = vmatprep.subr.bf16.mxu1 %v1908_v0  ;;  %s1672_s13 = sshll.u32 %s2571_s10, 2  ;;  %s1674_s14 = sshll.u32 %s2571_s10, 3 }
  0x10   : > { %1776 = vmatpush3.bf16.msra.mxu0 %v1908_v0  ;;  %1855 = vmatpush3.bf16.msra.mxu1 %v1908_v0  ;;  %s286_s17 = scalar_lea.vmem %s2551_s0, %s1672_s13  ;;  %s2057_s20 = scalar_lea.vmem %s2558_s7, %s1674_s14 }
  0x11   : > { %1777 = vmatprep.subr.bf16.mxu0 %v1909_v1  ;;  %1854 = vmatprep.subr.bf16.mxu1 %v1909_v1  ;;  %v1910_v2 = vld [vmem:[%s286_s17] sm:$0xff]   ;;  %v1912_v4 = vld [vmem:[%s286_s17 + $0x8] sm:$0xff]   ;;  %v1914_v6 = vld [vmem:[%s286_s17 + $0x10] sm:$0xff]  }
  0x12   : > { %v1911_v3 = vld [vmem:[%s286_s17 + $0x20] sm:$0xff]   ;;  %1779 = vmatprep.mubr.msk.bf16.mxu0 %vm367_vm0, %v1910_v2  ;;  %v1913_v5 = vld [vmem:[%s286_s17 + $0x28] sm:$0xff]   ;;  %v1915_v7 = vld [vmem:[%s286_s17 + $0x30] sm:$0xff]  }
  0x13   : > { %1787 = vmatprep.mubr.msk.bf16.mxu1 %vm367_vm0, %v1911_v3  ;;  %v1916_v8 = vld [vmem:[%s286_s17 + $0x18] sm:$0xff]  }
  0x14   : > { %1778 = vmatpush3.bf16.msra.mxu0 %v1909_v1  ;;  %1856 = vmatpush3.bf16.msra.mxu1 %v1909_v1  ;;  %v1917_v9 = vld [vmem:[%s286_s17 + $0x38] sm:$0xff]  }
  0x17   : > { %1780 = vmatmul.mubr.msk.bf16.vlgmr.msra.gmra.mxu0 %vm367_vm0, %v1912_v4  ;;  %1788 = vmatmul.mubr.msk.bf16.vlgmr.msra.gmra.mxu1 %vm367_vm0, %v1913_v5 }
  0x18   : > { %1783 = vmatprep.mubr.msk.bf16.mxu0 %vm367_vm0, %v1914_v6  ;;  %1791 = vmatprep.mubr.msk.bf16.mxu1 %vm367_vm0, %v1915_v7 }
  0x1f   : > { %1784 = vmatmul.mubr.msk.bf16.gmra.mxu0 %vm367_vm0, %v1916_v8  ;;  %1792 = vmatmul.mubr.msk.bf16.gmra.mxu1 %vm367_vm0, %v1917_v9 }
  0xd7   : > { %v2077_v10 = vpop.f32.mrf.mxu0  ;;  %v2079_v11 = vpop.f32.mrf.mxu1 }
  0xd9   : > { %v2081_v12 = vpop.f32.mrf.mxu0  ;;  %v2083_v13 = vpop.f32.mrf.mxu1 }
  0xdb   : > { %v2085_v14 = vpop.f32.mrf.mxu0  ;;  %v2087_v15 = vpop.f32.mrf.mxu1 }
  0xdd   : > { %v2089_v16 = vpop.f32.mrf.mxu0  ;;  %v2091_v17 = vpop.f32.mrf.mxu1 }
  0xdf   : > { %v2093_v18 = vpop.f32.mrf.mxu0  ;;  %v2095_v19 = vpop.f32.mrf.mxu1 }
  0xe1   : > { %v2097_v20 = vpop.f32.mrf.mxu0  ;;  %v2099_v21 = vpop.f32.mrf.mxu1  ;;  %494 = sbr.rel (%p2073_p8) target bundleno = 232 (0xe8), region = 52 }
  0xe3   : > { %v2101_v22 = vpop.f32.mrf.mxu0  ;;  %v2103_v23 = vpop.f32.mrf.mxu1 }
  0xe5   : > { %v2105_v24 = vpop.f32.mrf.mxu0  ;;  %v2107_v25 = vpop.f32.mrf.mxu1 }
  0xe6   : > { %vm495_vm1 = vcmask 189440   ;;  %v1967_v26 = vmov 0.0  }
  0xe7   : > { %496 = vst.msk [vmem:[#allocation2] sm:$0x3] %vm495_vm1, %v1967_v26 }
  0xe8 PF: > { %p1693_p9 = scmp.ne.s32.totalorder %s1953_s25, 0 }
  0xea   : > { %499 = sbr.rel (%p1693_p9) target bundleno = 288 (0x120), region = 56 }
  0xef   : > { %vm501_vm2 = vcmask 195584   ;;  %v543_v34 = vmul.f32 %v2081_v12, %v2081_v12  ;;  %v544_v35 = vmul.f32 %v2089_v16, %v2089_v16  ;;  %v545_v37 = vmul.f32 %v2077_v10, %v2077_v10 }
  0xf0   : > { %v502_v27 = vsel %vm501_vm2, %v2081_v12, 0.0  ;;  %v503_v28 = vsel %vm501_vm2, %v2089_v16, 0.0  ;;  %v505_v29 = vsel %vm501_vm2, %v2077_v10, 0.0  ;;  %v507_v31 = vsel %vm501_vm2, %v2085_v14, 0.0 }
  0xf1   : > { %v504_v30 = vadd.f32 %v503_v28, %v502_v27  ;;  %v509_v33 = vsel %vm501_vm2, %v2097_v20, 0.0  ;;  %v511_v38 = vsel %vm501_vm2, %v2105_v24, 0.0  ;;  %v546_v39 = vmul.f32 %v2085_v14, %v2085_v14 }
  0xf2   : > { %v513_v41 = vsel %vm501_vm2, %v2093_v18, 0.0  ;;  %v547_v42 = vmul.f32 %v2097_v20, %v2097_v20  ;;  %v559_v43 = vsel %vm501_vm2, %v543_v34, 0.0  ;;  %v560_v44 = vsel %vm501_vm2, %v544_v35, 0.0 }
  0xf3   : > { %v506_v32 = vadd.f32 %v505_v29, %v504_v30  ;;  %v561_v46 = vadd.f32 %v560_v44, %v559_v43  ;;  %v562_v47 = vsel %vm501_vm2, %v545_v37, 0.0  ;;  %v515_v48 = vsel %vm501_vm2, %v2101_v22, 0.0 }
  0xf4   : > { %v548_v49 = vmul.f32 %v2105_v24, %v2105_v24  ;;  %v564_v50 = vsel %vm501_vm2, %v546_v39, 0.0  ;;  %v517_v53 = vsel %vm501_vm2, %v2083_v13, 0.0  ;;  %v549_v54 = vmul.f32 %v2093_v18, %v2093_v18 }
  0xf5   : > { %v508_v36 = vadd.f32 %v507_v31, %v506_v32  ;;  %v563_v52 = vadd.f32 %v562_v47, %v561_v46  ;;  %v566_v55 = vsel %vm501_vm2, %v547_v42, 0.0  ;;  %v519_v58 = vsel %vm501_vm2, %v2091_v17, 0.0 }
  0xf6   : > { %v550_v59 = vmul.f32 %v2101_v22, %v2101_v22  ;;  %v568_v60 = vsel %vm501_vm2, %v548_v49, 0.0  ;;  %v521_v63 = vsel %vm501_vm2, %v2079_v11, 0.0  ;;  %v551_v0 = vmul.f32 %v2083_v13, %v2083_v13 }
  0xf7   : > { %v510_v40 = vadd.f32 %v509_v33, %v508_v36  ;;  %v565_v57 = vadd.f32 %v564_v50, %v563_v52  ;;  %v570_v1 = vsel %vm501_vm2, %v549_v54, 0.0  ;;  %v523_v4 = vsel %vm501_vm2, %v2087_v15, 0.0 }
  0xf8   : > { %v552_v5 = vmul.f32 %v2091_v17, %v2091_v17  ;;  %v572_v6 = vsel %vm501_vm2, %v550_v59, 0.0  ;;  %v525_v9 = vsel %vm501_vm2, %v2099_v21, 0.0  ;;  %v553_v26 = vmul.f32 %v2079_v11, %v2079_v11 }
  0xf9   : > { %v512_v45 = vadd.f32 %v511_v38, %v510_v40  ;;  %v567_v62 = vadd.f32 %v566_v55, %v565_v57  ;;  %v574_v27 = vsel %vm501_vm2, %v551_v0, 0.0  ;;  %v527_v30 = vsel %vm501_vm2, %v2107_v25, 0.0 }
  0xfa   : > { %v554_v31 = vmul.f32 %v2087_v15, %v2087_v15  ;;  %v576_v32 = vsel %vm501_vm2, %v552_v5, 0.0  ;;  %v529_v35 = vsel %vm501_vm2, %v2095_v19, 0.0  ;;  %v555_v36 = vmul.f32 %v2099_v21, %v2099_v21 }
  0xfb   : > { %v514_v51 = vadd.f32 %v513_v41, %v512_v45  ;;  %v569_v3 = vadd.f32 %v568_v60, %v567_v62  ;;  %v578_v37 = vsel %vm501_vm2, %v553_v26, 0.0  ;;  %v531_v40 = vsel %vm501_vm2, %v2103_v23, 0.0 }
  0xfc   : > { %v556_v41 = vmul.f32 %v2107_v25, %v2107_v25  ;;  %v580_v42 = vsel %vm501_vm2, %v554_v31, 0.0  ;;  %v557_v45 = vmul.f32 %v2095_v19, %v2095_v19  ;;  %v582_v46 = vsel %vm501_vm2, %v555_v36, 0.0 }
  0xfd   : > { %v516_v56 = vadd.f32 %v515_v48, %v514_v51  ;;  %v571_v8 = vadd.f32 %v570_v1, %v569_v3  ;;  %v558_v49 = vmul.f32 %v2103_v23, %v2103_v23  ;;  %vm540_vm3 = vcmask 188416  }
  0xfe   : > { %v584_v50 = vsel %vm501_vm2, %v556_v41, 0.0 }
  0xff   : > { %v518_v61 = vadd.f32 %v517_v53, %v516_v56  ;;  %v573_v29 = vadd.f32 %v572_v6, %v571_v8  ;;  %v586_v53 = vsel %vm501_vm2, %v557_v45, 0.0  ;;  %v588_v56 = vsel %vm501_vm2, %v558_v49, 0.0  ;;  %v542_v6 = vld [vmem:[#allocation2 + $0x1] sm:$0x1] }
 0x101   : > { %v520_v2 = vadd.f32 %v519_v58, %v518_v61  ;;  %v575_v34 = vadd.f32 %v574_v27, %v573_v29 }
 0x103   : > { %v522_v7 = vadd.f32 %v521_v63, %v520_v2  ;;  %v577_v39 = vadd.f32 %v576_v32, %v575_v34  ;;  %v500_v63 = vld [vmem:[#allocation2] sm:$0x1] }
 0x105   : > { %v524_v28 = vadd.f32 %v523_v4, %v522_v7  ;;  %v579_v44 = vadd.f32 %v578_v37, %v577_v39 }
 0x107   : > { %v526_v33 = vadd.f32 %v525_v9, %v524_v28  ;;  %v581_v48 = vadd.f32 %v580_v42, %v579_v44 }
 0x109   : > { %v528_v38 = vadd.f32 %v527_v30, %v526_v33  ;;  %v583_v52 = vadd.f32 %v582_v46, %v581_v48 }
 0x10b   : > { %v530_v43 = vadd.f32 %v529_v35, %v528_v38  ;;  %v585_v55 = vadd.f32 %v584_v50, %v583_v52 }
 0x10d   : > { %v532_v47 = vadd.f32 %v531_v40, %v530_v43  ;;  %v587_v58 = vadd.f32 %v586_v53, %v585_v55 }
 0x10f   : > { %v533_v51 = vrot.slane %v532_v47, 4  ;;  %v589_v60 = vadd.f32 %v588_v56, %v587_v58 }
 0x111   : > { %v534_v54 = vadd.f32 %v533_v51, %v532_v47  ;;  %v590_v62 = vrot.slane %v589_v60, 4 }
 0x113   : > { %v535_v57 = vrot.slane %v534_v54, 2  ;;  %v591_v1 = vadd.f32 %v590_v62, %v589_v60 }
 0x115   : > { %v536_v59 = vadd.f32 %v535_v57, %v534_v54  ;;  %v592_v3 = vrot.slane %v591_v1, 2 }
 0x117   : > { %v537_v61 = vrot.slane %v536_v59, 1  ;;  %v593_v4 = vadd.f32 %v592_v3, %v591_v1 }
 0x119   : > { %v538_v0 = vadd.f32 %v537_v61, %v536_v59  ;;  %v594_v5 = vrot.slane %v593_v4, 1 }
 0x11b   : > { %v539_v2 = vadd.f32 %v538_v0, %v500_v63  ;;  %v595_v7 = vadd.f32 %v594_v5, %v593_v4 }
 0x11d   : > { %541 = vst.msk [vmem:[#allocation2] sm:$0x1] %vm540_vm3, %v539_v2  ;;  %v596_v8 = vadd.f32 %v595_v7, %v542_v6 }
 0x11f   : > { %597 = vst.msk [vmem:[#allocation2 + $0x1] sm:$0x1] %vm540_vm3, %v596_v8 }
 0x120 PF: > { %p598_p10 = scmp.eq.s32.totalorder %s1949_s24, 1 }
 0x122   : > { %p599_p11 = pnand %p598_p10, %p489_p6 }
 0x124   : > { %602 = sbr.rel (%p599_p11) target bundleno = 327 (0x147), region = 60 }
 0x129   : > { %v603_v9 = vld [vmem:[#allocation2] sm:$0x1]  ;;  %v605_v26 = vld [vmem:[#allocation2 + $0x1] sm:$0x1]  ;;  %vm613_vm4 = vcmask 188416  }
 0x12a   : > { %v604_v27 = vmul.f32 0.005, %v603_v9  ;;  %v606_v28 = vmul.f32 0.005, %v605_v26  ;;  %v609_v32 = vld [vmem:[%s2555_s4] sm:$0x1] }
 0x12b   : > { %v615_v35 = vld [vmem:[%s2555_s4 + $0x1] sm:$0x1] }
 0x12c   : > { %v607_v29 = vmul.f32 %v604_v27, %v604_v27 }
 0x12e   : > { %v608_v30 = vsub.f32 %v606_v28, %v607_v29 }
 0x130   : > { %v610_v31 = vadd.f32 1e-05, %v608_v30 }
 0x132   : > { %1918 = vrsqrt.f32 %v610_v31 }
 0x13f   : > { %v1919_v33 = vpop.eup %1918 }
 0x140   : > { %v612_v34 = vmul.f32 %v1919_v33, %v609_v32 }
 0x142   : > { %614 = vst.msk [vmem:[#allocation2] sm:$0x1] %vm613_vm4, %v612_v34  ;;  %v616_v36 = vmul.f32 %v612_v34, %v604_v27 }
 0x144   : > { %v617_v37 = vsub.f32 %v615_v35, %v616_v36 }
 0x146   : > { %618 = vst.msk [vmem:[#allocation2 + $0x1] sm:$0x1] %vm613_vm4, %v617_v37 }
 0x147 PF: > { %p619_p12 = scmp.eq.s32.totalorder %s1953_s25, 1 }
 0x149   : > { %p620_p13 = pnand %p619_p12, %p490_p7 }
 0x14b   : > { %623 = sbr.rel (%p620_p13) target bundleno = 338 (0x152), region = 64 }
 0x150   : > { %vm624_vm5 = vcmask 74752   ;;  %v1968_v38 = vmov 0.0  }
 0x151   : > { %625 = vst.msk [vmem:[#allocation3] sm:$0x3] %vm624_vm5, %v1968_v38 }
 0x152 PF: > { %p1694_p0 = scmp.ne.s32.totalorder %s1953_s25, 1 }
 0x153   : > { %s1697_s14 = sshll.u32 (!%p1694_p0), %s1949_s24, 7 }
 0x154   : > { %628 = sbr.rel (%p1694_p0) target bundleno = 612 (0x264), region = 68 }
 0x159   : > { %v1920_v39 = vld [vmem:[%s2553_s2 + $0x8] ss:$0 sps:$4 sm:$0xff]   ;;  %vm863_vm6 = vcmask 1043456   ;;  %v1921_v40 = vld [vmem:[%s2553_s2] sm:$0xff]   ;;  %v719_v41 = vlaneseq  ;;  %v2226_v48 = vstv %s1697_s14  ;;  %vm838_vm7 = vcmask 195584  }
 0x15a   : > { %v2215_v42 = vld [vmem:[#allocation2] ss:$0 sm:$0xff]  ;;  %1861 = vmatprep.subr.msk.bf16.mxu0 %vm863_vm6, %v1920_v39  ;;  %v865_v43 = vsel %vm863_vm6, %v1920_v39, 0  ;;  %v2221_v46 = vld [vmem:[#allocation2 + $0x1] ss:$0 sm:$0xff]  ;;  %1862 = vmatprep.subr.msk.bf16.mxu1 %vm863_vm6, %v1920_v39 }
 0x15b   : > { %v634_v44 = vmul.f32 %v2215_v42, %v2081_v12  ;;  %v635_v45 = vmul.f32 %v2215_v42, %v2089_v16  ;;  %v2223_v47 = vshrl.u32 %v719_v41, 7  ;;  %1796 = vmatpush3.bf16.msra.mxu0 %v865_v43  ;;  %v636_v49 = vmul.f32 %v2077_v10, %v2215_v42  ;;  %1859 = vmatpush3.bf16.msra.mxu1 %v865_v43 }
 0x15c   : > { %v637_v50 = vmul.f32 %v2085_v14, %v2215_v42  ;;  %1797 = vmatprep.subr.bf16.mxu0 %v1921_v40  ;;  %1858 = vmatprep.subr.bf16.mxu1 %v1921_v40  ;;  %v638_v8 = vmul.f32 %v2215_v42, %v2097_v20  ;;  %v639_v26 = vmul.f32 %v2215_v42, %v2105_v24 }
 0x15d   : > { %v655_v51 = vadd.f32 %v2221_v46, %v634_v44  ;;  %v656_v52 = vadd.f32 %v2221_v46, %v635_v45  ;;  %v721_v53 = vadd.s32 8, %v2223_v47  ;;  %v738_v54 = vadd.s32 %v2226_v48, %v2223_v47 }
 0x15e   : > { %v657_v55 = vadd.f32 %v2221_v46, %v636_v49  ;;  %v658_v56 = vadd.f32 %v2221_v46, %v637_v50  ;;  %v722_v57 = vadd.s32 16, %v2223_v47  ;;  %v723_v58 = vadd.s32 24, %v2223_v47 }
 0x15f   : > { %vm671_vm8 = vcmp.ge.f32.partialorder %v655_v51, 0.0  ;;  %vm672_vm9 = vcmp.ge.f32.partialorder %v656_v52, 0.0  ;;  %v687_v59 = vmul.f32 0.01, %v655_v51  ;;  %v688_v60 = vmul.f32 0.01, %v656_v52  ;;  %1798 = vmatpush3.bf16.msra.mxu0 %v1921_v40  ;;  %1860 = vmatpush3.bf16.msra.mxu1 %v1921_v40 }
 0x160   : > { %v739_v61 = vadd.s32 %v2226_v48, %v721_v53  ;;  %vm754_vm10 = vcmp.lt.s32.totalorder %v738_v54, 200  ;;  %vm673_vm11 = vcmp.ge.f32.partialorder %v657_v55, 0.0  ;;  %vm674_vm12 = vcmp.ge.f32.partialorder %v658_v56, 0.0 }
 0x161   : > { %v703_v62 = vsel %vm671_vm8, %v655_v51, %v687_v59  ;;  %v704_v63 = vsel %vm672_vm9, %v656_v52, %v688_v60  ;;  %v689_v0 = vmul.f32 0.01, %v657_v55  ;;  %v690_v1 = vmul.f32 0.01, %v658_v56 }
 0x162   : > { %vm755_vm13 = vcmp.lt.s32.totalorder %v739_v61, 200  ;;  %v802_v2 = vsel %vm754_vm10, %v703_v62, 0.0  ;;  %v740_v3 = vadd.s32 %v2226_v48, %v722_v57  ;;  %v741_v4 = vadd.s32 %v2226_v48, %v723_v58 }
 0x163   : > { %v803_v5 = vsel %vm755_vm13, %v704_v63, 0.0  ;;  %v705_v6 = vsel %vm673_vm11, %v657_v55, %v689_v0  ;;  %v706_v7 = vsel %vm674_vm12, %v658_v56, %v690_v1  ;;  %v659_v29 = vadd.f32 %v2221_v46, %v638_v8 }
 0x164   : > { %v818_v9 = vpack.c.bf16 %v803_v5, %v802_v2  ;;  %vm756_vm14 = vcmp.lt.s32.totalorder %v740_v3, 200  ;;  %vm757_vm15 = vcmp.lt.s32.totalorder %v741_v4, 200  ;;  %v724_v30 = vadd.s32 32, %v2223_v47 }
 0x165   : > { %v804_v27 = vsel %vm756_vm14, %v705_v6, 0.0  ;;  %v805_v28 = vsel %vm757_vm15, %v706_v7, 0.0  ;;  %v660_v32 = vadd.f32 %v2221_v46, %v639_v26  ;;  %v725_v33 = vadd.s32 40, %v2223_v47 }
 0x166   : > { %1799 = vmatprep.mubr.msk.bf16.mxu0 %vm838_vm7, %v818_v9  ;;  %v819_v31 = vpack.c.bf16 %v805_v28, %v804_v27  ;;  %v640_v34 = vmul.f32 %v2093_v18, %v2215_v42  ;;  %vm675_vm0 = vcmp.ge.f32.partialorder %v659_v29, 0.0  ;;  %v691_v35 = vmul.f32 0.01, %v659_v29 }
 0x167   : > { %v742_v36 = vadd.s32 %v2226_v48, %v724_v30  ;;  %v641_v37 = vmul.f32 %v2101_v22, %v2215_v42  ;;  %vm676_vm1 = vcmp.ge.f32.partialorder %v660_v32, 0.0  ;;  %v692_v38 = vmul.f32 0.01, %v660_v32 }
 0x168   : > { %1800 = vmatmul.mubr.msk.bf16.vlgmr.msra.gmra.mxu0 %vm838_vm7, %v819_v31  ;;  %v743_v39 = vadd.s32 %v2226_v48, %v725_v33  ;;  %v661_v40 = vadd.f32 %v2221_v46, %v640_v34  ;;  %v707_v41 = vsel %vm675_vm0, %v659_v29, %v691_v35  ;;  %v726_v44 = vadd.s32 48, %v2223_v47 }
 0x169   : > { %vm758_vm2 = vcmp.lt.s32.totalorder %v742_v36, 200  ;;  %v662_v43 = vadd.f32 %v2221_v46, %v641_v37  ;;  %v708_v45 = vsel %vm676_vm1, %v660_v32, %v692_v38  ;;  %v727_v54 = vadd.s32 56, %v2223_v47 }
 0x16a   : > { %vm759_vm3 = vcmp.lt.s32.totalorder %v743_v39, 200  ;;  %v806_v49 = vsel %vm758_vm2, %v707_v41, 0.0  ;;  %vm677_vm4 = vcmp.ge.f32.partialorder %v661_v40, 0.0  ;;  %v693_v51 = vmul.f32 0.01, %v661_v40 }
 0x16b   : > { %v807_v50 = vsel %vm759_vm3, %v708_v45, 0.0  ;;  %vm678_vm5 = vcmp.ge.f32.partialorder %v662_v43, 0.0  ;;  %v694_v52 = vmul.f32 0.01, %v662_v43  ;;  %v744_v55 = vadd.s32 %v2226_v48, %v726_v44 }
 0x16c   : > { %v820_v53 = vpack.c.bf16 %v807_v50, %v806_v49  ;;  %v642_v56 = vmul.f32 %v2215_v42, %v2083_v13  ;;  %v709_v57 = vsel %vm677_vm4, %v661_v40, %v693_v51  ;;  %v643_v59 = vmul.f32 %v2215_v42, %v2091_v17 }
 0x16d   : > { %v710_v58 = vsel %vm678_vm5, %v662_v43, %v694_v52  ;;  %v728_v60 = vadd.s32 64, %v2223_v47  ;;  %v745_v61 = vadd.s32 %v2226_v48, %v727_v54  ;;  %vm760_vm6 = vcmp.lt.s32.totalorder %v744_v55, 200 }
 0x16e   : > { %1803 = vmatprep.mubr.msk.bf16.mxu0 %vm838_vm7, %v820_v53  ;;  %v663_v62 = vadd.f32 %v2221_v46, %v642_v56  ;;  %v729_v63 = vadd.s32 72, %v2223_v47  ;;  %v808_v0 = vsel %vm760_vm6, %v709_v57, 0.0  ;;  %v664_v1 = vadd.f32 %v2221_v46, %v643_v59 }
 0x16f   : > { %v746_v2 = vadd.s32 %v2226_v48, %v728_v60  ;;  %v644_v3 = vmul.f32 %v2079_v11, %v2215_v42  ;;  %vm761_vm8 = vcmp.lt.s32.totalorder %v745_v61, 200  ;;  %v645_v26 = vmul.f32 %v2087_v15, %v2215_v42 }
 0x170   : > { %vm679_vm9 = vcmp.ge.f32.partialorder %v663_v62, 0.0  ;;  %v695_v4 = vmul.f32 0.01, %v663_v62  ;;  %v747_v5 = vadd.s32 %v2226_v48, %v729_v63  ;;  %v809_v6 = vsel %vm761_vm8, %v710_v58, 0.0 }
 0x171   : > { %vm680_vm10 = vcmp.ge.f32.partialorder %v664_v1, 0.0  ;;  %v696_v7 = vmul.f32 0.01, %v664_v1  ;;  %vm762_vm11 = vcmp.lt.s32.totalorder %v746_v2, 200  ;;  %v821_v8 = vpack.c.bf16 %v809_v6, %v808_v0 }
 0x172   : > { %v711_v9 = vsel %vm679_vm9, %v663_v62, %v695_v4  ;;  %vm763_vm12 = vcmp.lt.s32.totalorder %v747_v5, 200  ;;  %v665_v29 = vadd.f32 %v2221_v46, %v644_v3  ;;  %v730_v30 = vadd.s32 80, %v2223_v47 }
 0x173   : > { %v712_v27 = vsel %vm680_vm10, %v664_v1, %v696_v7  ;;  %v810_v28 = vsel %vm762_vm11, %v711_v9, 0.0  ;;  %1804 = vmatmul.mubr.msk.bf16.gmra.mxu0 %vm838_vm7, %v821_v8  ;;  %v666_v32 = vadd.f32 %v2221_v46, %v645_v26  ;;  %v731_v33 = vadd.s32 88, %v2223_v47 }
 0x174   : > { %v811_v31 = vsel %vm763_vm12, %v712_v27, 0.0  ;;  %v646_v34 = vmul.f32 %v2215_v42, %v2099_v21  ;;  %vm681_vm13 = vcmp.ge.f32.partialorder %v665_v29, 0.0  ;;  %v697_v36 = vmul.f32 0.01, %v665_v29 }
 0x175   : > { %v822_v35 = vpack.c.bf16 %v811_v31, %v810_v28  ;;  %v748_v37 = vadd.s32 %v2226_v48, %v730_v30  ;;  %vm682_vm14 = vcmp.ge.f32.partialorder %v666_v32, 0.0  ;;  %v698_v38 = vmul.f32 0.01, %v666_v32 }
 0x176   : > { %v749_v39 = vadd.s32 %v2226_v48, %v731_v33  ;;  %v647_v40 = vmul.f32 %v2215_v42, %v2107_v25  ;;  %v713_v41 = vsel %vm681_vm13, %v665_v29, %v697_v36  ;;  %v667_v43 = vadd.f32 %v2221_v46, %v646_v34 }
 0x177   : > { %1807 = vmatprep.mubr.msk.bf16.mxu1 %vm838_vm7, %v822_v35  ;;  %vm764_vm15 = vcmp.lt.s32.totalorder %v748_v37, 200  ;;  %v732_v44 = vadd.s32 96, %v2223_v47  ;;  %v714_v45 = vsel %vm682_vm14, %v666_v32, %v698_v38  ;;  %v733_v53 = vadd.s32 104, %v2223_v47 }
 0x178   : > { %vm765_vm0 = vcmp.lt.s32.totalorder %v749_v39, 200  ;;  %v812_v49 = vsel %vm764_vm15, %v713_v41, 0.0  ;;  %v668_v50 = vadd.f32 %v2221_v46, %v647_v40  ;;  %vm683_vm1 = vcmp.ge.f32.partialorder %v667_v43, 0.0 }
 0x179   : > { %v813_v51 = vsel %vm765_vm0, %v714_v45, 0.0  ;;  %v699_v52 = vmul.f32 0.01, %v667_v43  ;;  %v750_v56 = vadd.s32 %v2226_v48, %v732_v44  ;;  %v751_v58 = vadd.s32 %v2226_v48, %v733_v53 }
 0x17a   : > { %v823_v54 = vpack.c.bf16 %v813_v51, %v812_v49  ;;  %vm684_vm2 = vcmp.ge.f32.partialorder %v668_v50, 0.0  ;;  %v700_v55 = vmul.f32 0.01, %v668_v50  ;;  %v648_v59 = vmul.f32 %v2095_v19, %v2215_v42 }
 0x17b   : > { %v715_v57 = vsel %vm683_vm1, %v667_v43, %v699_v52  ;;  %v649_v60 = vmul.f32 %v2103_v23, %v2215_v42  ;;  %vm766_vm3 = vcmp.lt.s32.totalorder %v750_v56, 200  ;;  %v734_v62 = vadd.s32 112, %v2223_v47 }
 0x17c   : > { %1808 = vmatmul.mubr.msk.bf16.vlgmr.msra.gmra.mxu1 %vm838_vm7, %v823_v54  ;;  %v716_v61 = vsel %vm684_vm2, %v668_v50, %v700_v55  ;;  %v735_v63 = vadd.s32 120, %v2223_v47  ;;  %vm767_vm4 = vcmp.lt.s32.totalorder %v751_v58, 200  ;;  %v814_v0 = vsel %vm766_vm3, %v715_v57, 0.0 }
 0x17d   : > { %v669_v1 = vadd.f32 %v2221_v46, %v648_v59  ;;  %v670_v2 = vadd.f32 %v2221_v46, %v649_v60  ;;  %v815_v3 = vsel %vm767_vm4, %v716_v61, 0.0  ;;  %v752_v4 = vadd.s32 %v2226_v48, %v734_v62 }
 0x17e   : > { %v753_v5 = vadd.s32 %v2226_v48, %v735_v63  ;;  %v824_v42 = vpack.c.bf16 %v815_v3, %v814_v0  ;;  %vm965_vm10 = vcmask 80896  }
 0x17f   : > { %vm685_vm5 = vcmp.ge.f32.partialorder %v669_v1, 0.0  ;;  %vm686_vm6 = vcmp.ge.f32.partialorder %v670_v2, 0.0  ;;  %v701_v6 = vmul.f32 0.01, %v669_v1  ;;  %v702_v7 = vmul.f32 0.01, %v670_v2 }
 0x180   : > { %vm768_vm8 = vcmp.lt.s32.totalorder %v752_v4, 200  ;;  %vm769_vm9 = vcmp.lt.s32.totalorder %v753_v5, 200  ;;  %1811 = vmatprep.mubr.msk.bf16.mxu1 %vm838_vm7, %v824_v42 }
 0x181   : > { %v717_v47 = vsel %vm685_vm5, %v669_v1, %v701_v6  ;;  %v718_v8 = vsel %vm686_vm6, %v670_v2, %v702_v7 }
 0x182   : > { %v816_v9 = vsel %vm768_vm8, %v717_v47, 0.0  ;;  %v817_v26 = vsel %vm769_vm9, %v718_v8, 0.0 }
 0x183   : > { %v825_v27 = vpack.c.bf16 %v817_v26, %v816_v9 }
 0x185   : > { %1812 = vmatmul.mubr.msk.bf16.gmra.mxu1 %vm838_vm7, %v825_v27  ;;  %vm1004_vm7 = vcmask 73728  }
 0x228   : > { %v1801_v46 = vpop.f32.mrf.mxu0 }
 0x229   : > { %v1009_v31 = vmul.f32 %v1801_v46, %v1801_v46  ;;  %v969_v36 = vsel %vm965_vm10, %v1801_v46, 0.0 }
 0x22a   : > { %v901_v28 = vpop.f32.mrf.mxu0 }
 0x22b   : > { %v1007_v48 = vmul.f32 %v901_v28, %v901_v28  ;;  %v966_v32 = vsel %vm965_vm10, %v901_v28, 0.0  ;;  %v1026_v43 = vsel %vm965_vm10, %v1009_v31, 0.0 }
 0x22c   : > { %v1802_v29 = vpop.f32.mrf.mxu0 }
 0x22d   : > { %v1023_v37 = vsel %vm965_vm10, %v1007_v48, 0.0  ;;  %v1010_v38 = vmul.f32 %v1802_v29, %v1802_v29  ;;  %v971_v44 = vsel %vm965_vm10, %v1802_v29, 0.0 }
 0x22e   : > { %v904_v30 = vpop.f32.mrf.mxu0 }
 0x22f   : > { %v967_v33 = vsel %vm965_vm10, %v904_v30, 0.0  ;;  %v1008_v34 = vmul.f32 %v904_v30, %v904_v30  ;;  %v1028_v51 = vsel %vm965_vm10, %v1010_v38, 0.0 }
 0x230   : > { %v968_v35 = vadd.f32 %v967_v33, %v966_v32 }
 0x231   : > { %v1024_v39 = vsel %vm965_vm10, %v1008_v34, 0.0 }
 0x232   : > { %v970_v40 = vadd.f32 %v969_v36, %v968_v35  ;;  %v1025_v41 = vadd.f32 %v1024_v39, %v1023_v37 }
 0x233   : > { %v1805_v49 = vpop.f32.mrf.mxu0 }
 0x234   : > { %v1027_v45 = vadd.f32 %v1026_v43, %v1025_v41  ;;  %v972_v50 = vadd.f32 %v971_v44, %v970_v40  ;;  %v1013_v61 = vmul.f32 %v1805_v49, %v1805_v49  ;;  %v977_v2 = vsel %vm965_vm10, %v1805_v49, 0.0 }
 0x235   : > { %v917_v52 = vpop.f32.mrf.mxu0 }
 0x236   : > { %v1029_v53 = vadd.f32 %v1028_v51, %v1027_v45  ;;  %v973_v54 = vsel %vm965_vm10, %v917_v52, 0.0  ;;  %v1011_v55 = vmul.f32 %v917_v52, %v917_v52  ;;  %v1034_v7 = vsel %vm965_vm10, %v1013_v61, 0.0 }
 0x237   : > { %v974_v56 = vadd.f32 %v973_v54, %v972_v50  ;;  %v1806_v57 = vpop.f32.mrf.mxu0 }
 0x238   : > { %v1030_v58 = vsel %vm965_vm10, %v1011_v55, 0.0  ;;  %v1014_v3 = vmul.f32 %v1806_v57, %v1806_v57  ;;  %v979_v47 = vsel %vm965_vm10, %v1806_v57, 0.0 }
 0x239   : > { %v1031_v59 = vadd.f32 %v1030_v58, %v1029_v53  ;;  %v920_v60 = vpop.f32.mrf.mxu0 }
 0x23a   : > { %v975_v62 = vsel %vm965_vm10, %v920_v60, 0.0  ;;  %v1012_v63 = vmul.f32 %v920_v60, %v920_v60  ;;  %v1036_v46 = vsel %vm965_vm10, %v1014_v3, 0.0 }
 0x23b   : > { %v976_v1 = vadd.f32 %v975_v62, %v974_v56 }
 0x23c   : > { %v1809_v0 = vpop.f32.mrf.mxu1  ;;  %v1032_v4 = vsel %vm965_vm10, %v1012_v63, 0.0 }
 0x23d   : > { %v978_v42 = vadd.f32 %v977_v2, %v976_v1  ;;  %v1033_v6 = vadd.f32 %v1032_v4, %v1031_v59  ;;  %v1017_v31 = vmul.f32 %v1809_v0, %v1809_v0  ;;  %v985_v37 = vsel %vm965_vm10, %v1809_v0, 0.0 }
 0x23e   : > { %v933_v5 = vpop.f32.mrf.mxu1 }
 0x23f   : > { %v1015_v8 = vmul.f32 %v933_v5, %v933_v5  ;;  %v980_v9 = vadd.f32 %v979_v47, %v978_v42  ;;  %v1035_v26 = vadd.f32 %v1034_v7, %v1033_v6  ;;  %v981_v28 = vsel %vm965_vm10, %v933_v5, 0.0 }
 0x240   : > { %v1810_v27 = vpop.f32.mrf.mxu1  ;;  %v1042_v44 = vsel %vm965_vm10, %v1017_v31, 0.0 }
 0x241   : > { %v1037_v29 = vadd.f32 %v1036_v46, %v1035_v26  ;;  %v982_v30 = vadd.f32 %v981_v28, %v980_v9  ;;  %v1038_v32 = vsel %vm965_vm10, %v1015_v8, 0.0  ;;  %v1018_v38 = vmul.f32 %v1810_v27, %v1810_v27 }
 0x242   : > { %v936_v48 = vpop.f32.mrf.mxu1  ;;  %v987_v45 = vsel %vm965_vm10, %v1810_v27, 0.0 }
 0x243   : > { %v983_v33 = vsel %vm965_vm10, %v936_v48, 0.0  ;;  %v1016_v34 = vmul.f32 %v936_v48, %v936_v48  ;;  %v1039_v36 = vadd.f32 %v1038_v32, %v1037_v29  ;;  %v1044_v52 = vsel %vm965_vm10, %v1018_v38, 0.0 }
 0x244   : > { %v984_v35 = vadd.f32 %v983_v33, %v982_v30  ;;  %v964_v33 = vld [vmem:[#allocation3] sm:$0x1] }
 0x245   : > { %v1040_v39 = vsel %vm965_vm10, %v1016_v34, 0.0  ;;  %v1813_v43 = vpop.f32.mrf.mxu1 }
 0x246   : > { %v986_v40 = vadd.f32 %v985_v37, %v984_v35  ;;  %v1041_v41 = vadd.f32 %v1040_v39, %v1039_v36  ;;  %v1021_v61 = vmul.f32 %v1813_v43, %v1813_v43  ;;  %v993_v1 = vsel %vm965_vm10, %v1813_v43, 0.0  ;;  %v1006_v36 = vld [vmem:[#allocation3 + $0x1] sm:$0x1] }
 0x247   : > { %v949_v50 = vpop.f32.mrf.mxu1 }
 0x248   : > { %v1043_v49 = vadd.f32 %v1042_v44, %v1041_v41  ;;  %v988_v51 = vadd.f32 %v987_v45, %v986_v40  ;;  %v989_v53 = vsel %vm965_vm10, %v949_v50, 0.0  ;;  %v1019_v54 = vmul.f32 %v949_v50, %v949_v50 }
 0x249   : > { %v1814_v57 = vpop.f32.mrf.mxu1  ;;  %v1050_v42 = vsel %vm965_vm10, %v1021_v61, 0.0 }
 0x24a   : > { %v990_v55 = vadd.f32 %v989_v53, %v988_v51  ;;  %v1045_v56 = vadd.f32 %v1044_v52, %v1043_v49  ;;  %v1046_v58 = vsel %vm965_vm10, %v1019_v54, 0.0  ;;  %v1022_v2 = vmul.f32 %v1814_v57, %v1814_v57 }
 0x24b   : > { %v952_v60 = vpop.f32.mrf.mxu1  ;;  %v995_v6 = vsel %vm965_vm10, %v1814_v57, 0.0 }
 0x24c   : > { %v1047_v59 = vadd.f32 %v1046_v58, %v1045_v56  ;;  %v991_v62 = vsel %vm965_vm10, %v952_v60, 0.0  ;;  %v1020_v63 = vmul.f32 %v952_v60, %v952_v60  ;;  %v1052_v8 = vsel %vm965_vm10, %v1022_v2, 0.0 }
 0x24d   : > { %v992_v0 = vadd.f32 %v991_v62, %v990_v55 }
 0x24e   : > { %v1048_v3 = vsel %vm965_vm10, %v1020_v63, 0.0 }
 0x24f   : > { %v994_v4 = vadd.f32 %v993_v1, %v992_v0  ;;  %v1049_v5 = vadd.f32 %v1048_v3, %v1047_v59 }
 0x251   : > { %v996_v7 = vadd.f32 %v995_v6, %v994_v4  ;;  %v1051_v47 = vadd.f32 %v1050_v42, %v1049_v5 }
 0x253   : > { %v997_v9 = vrot.slane %v996_v7, 4  ;;  %v1053_v26 = vadd.f32 %v1052_v8, %v1051_v47 }
 0x255   : > { %v998_v27 = vadd.f32 %v997_v9, %v996_v7  ;;  %v1054_v46 = vrot.slane %v1053_v26, 4 }
 0x257   : > { %v999_v28 = vrot.slane %v998_v27, 2  ;;  %v1055_v29 = vadd.f32 %v1054_v46, %v1053_v26 }
 0x259   : > { %v1000_v48 = vadd.f32 %v999_v28, %v998_v27  ;;  %v1056_v30 = vrot.slane %v1055_v29, 2 }
 0x25b   : > { %v1001_v31 = vrot.slane %v1000_v48, 1  ;;  %v1057_v32 = vadd.f32 %v1056_v30, %v1055_v29 }
 0x25d   : > { %v1002_v34 = vadd.f32 %v1001_v31, %v1000_v48  ;;  %v1058_v35 = vrot.slane %v1057_v32, 1 }
 0x25f   : > { %v1003_v37 = vadd.f32 %v1002_v34, %v964_v33  ;;  %v1059_v38 = vadd.f32 %v1058_v35, %v1057_v32 }
 0x261   : > { %1005 = vst.msk [vmem:[#allocation3] sm:$0x1] %vm1004_vm7, %v1003_v37  ;;  %v1060_v39 = vadd.f32 %v1059_v38, %v1006_v36 }
 0x263   : > { %1061 = vst.msk [vmem:[#allocation3 + $0x1] sm:$0x1] %vm1004_vm7, %v1060_v39 }
 0x264 PF: > { %p1062_p1 = pnand %p619_p12, %p598_p10 }
 0x266   : > { %1065 = sbr.rel (%p1062_p1) target bundleno = 649 (0x289), region = 72 }
 0x26b   : > { %v1066_v40 = vld [vmem:[#allocation3] sm:$0x1]  ;;  %v1068_v41 = vld [vmem:[#allocation3 + $0x1] sm:$0x1]  ;;  %v1072_v51 = vld [vmem:[%s2556_s5] sm:$0x1] }
 0x26c   : > { %v1067_v43 = vmul.f32 0.005, %v1066_v40  ;;  %v1069_v44 = vmul.f32 0.005, %v1068_v41  ;;  %vm1076_vm11 = vcmask 73728  }
 0x26d   : > { %v1078_v54 = vld [vmem:[%s2556_s5 + $0x1] sm:$0x1] }
 0x26e   : > { %v1070_v45 = vmul.f32 %v1067_v43, %v1067_v43 }
 0x270   : > { %v1071_v49 = vsub.f32 %v1069_v44, %v1070_v45 }
 0x272   : > { %v1073_v50 = vadd.f32 1e-05, %v1071_v49 }
 0x274   : > { %1922 = vrsqrt.f32 %v1073_v50 }
 0x281   : > { %v1923_v52 = vpop.eup %1922 }
 0x282   : > { %v1075_v53 = vmul.f32 %v1923_v52, %v1072_v51 }
 0x284   : > { %1077 = vst.msk [vmem:[#allocation3] sm:$0x1] %vm1076_vm11, %v1075_v53  ;;  %v1079_v55 = vmul.f32 %v1075_v53, %v1067_v43 }
 0x286   : > { %v1080_v56 = vsub.f32 %v1078_v54, %v1079_v55 }
 0x288   : > { %1081 = vst.msk [vmem:[#allocation3 + $0x1] sm:$0x1] %vm1076_vm11, %v1080_v56 }
 0x289 PF: > { %p1708_p2 = scmp.eq.s32.totalorder %s1953_s25, 2 }
 0x28b   : > { %1085 = sbr.rel (%p1708_p2) target bundleno = 665 (0x299), region = 76 }
 0x290   : > { %vm1086_vm12 = vcmask 15360   ;;  %v1969_v57 = vmov 0.0  }
 0x291   : > { %1087 = vst.msk [vmem:[%s2057_s20] sm:$0xff] %vm1086_vm12, %v1969_v57  ;;  %1088 = vst.msk [vmem:[%s2057_s20 + $0x8] sm:$0xff] %vm1086_vm12, %v1969_v57 }
 0x292   : > { %1089 = vst.msk [vmem:[%s2057_s20 + $0x10] sm:$0xff] %vm1086_vm12, %v1969_v57  ;;  %1090 = vst.msk [vmem:[%s2057_s20 + $0x18] sm:$0xff] %vm1086_vm12, %v1969_v57 }
 0x293   : > { %1091 = vst.msk [vmem:[%s2057_s20 + $0x20] sm:$0xff] %vm1086_vm12, %v1969_v57  ;;  %1092 = vst.msk [vmem:[%s2057_s20 + $0x28] sm:$0xff] %vm1086_vm12, %v1969_v57 }
 0x294   : > { %1093 = vst.msk [vmem:[%s2057_s20 + $0x30] sm:$0xff] %vm1086_vm12, %v1969_v57  ;;  %1094 = vst.msk [vmem:[%s2057_s20 + $0x38] sm:$0xff] %vm1086_vm12, %v1969_v57 }
 0x295   : > { %1095 = vst.msk [vmem:[%s2057_s20 + $0x40] sm:$0xff] %vm1086_vm12, %v1969_v57  ;;  %1096 = vst.msk [vmem:[%s2057_s20 + $0x48] sm:$0xff] %vm1086_vm12, %v1969_v57 }
 0x296   : > { %1097 = vst.msk [vmem:[%s2057_s20 + $0x50] sm:$0xff] %vm1086_vm12, %v1969_v57  ;;  %1098 = vst.msk [vmem:[%s2057_s20 + $0x58] sm:$0xff] %vm1086_vm12, %v1969_v57 }
 0x297   : > { %1099 = vst.msk [vmem:[%s2057_s20 + $0x60] sm:$0xff] %vm1086_vm12, %v1969_v57  ;;  %1100 = vst.msk [vmem:[%s2057_s20 + $0x68] sm:$0xff] %vm1086_vm12, %v1969_v57 }
 0x298   : > { %1101 = vst.msk [vmem:[%s2057_s20 + $0x70] sm:$0xff] %vm1086_vm12, %v1969_v57  ;;  %1102 = vst.msk [vmem:[%s2057_s20 + $0x78] sm:$0xff] %vm1086_vm12, %v1969_v57 }
 0x299 PF: > { %p1709_p3 = scmp.ne.s32.totalorder %s1953_s25, 2 }
 0x29b   : > { %1106 = sbr.rel (%p1709_p3) target bundleno = 1119 (0x45f), region = 80 }
 0x2a0   : > { %v1924_v58 = vld [vmem:[%s2553_s2 + $0x8] ss:$0 sps:$4 sm:$0xff]   ;;  %vm1242_vm13 = vcmask 1043456   ;;  %v1925_v59 = vld [vmem:[%s2553_s2] sm:$0xff]   ;;  %vm1217_vm14 = vcmask 195584  }
 0x2a1   : > { %v2394_v60 = vld [vmem:[#allocation2] ss:$0 sm:$0xff]  ;;  %1863 = vmatprep.subr.msk.bf16.mxu0 %vm1242_vm13, %v1924_v58  ;;  %v1244_v61 = vsel %vm1242_vm13, %v1924_v58, 0  ;;  %v2400_v0 = vld [vmem:[#allocation2 + $0x1] ss:$0 sm:$0xff] }
 0x2a2   : > { %v1112_v62 = vmul.f32 %v2394_v60, %v2081_v12  ;;  %v1113_v63 = vmul.f32 %v2394_v60, %v2089_v16  ;;  %1816 = vmatpush3.bf16.msra.mxu0 %v1244_v61  ;;  %v1114_v1 = vmul.f32 %v2077_v10, %v2394_v60  ;;  %v1115_v2 = vmul.f32 %v2085_v14, %v2394_v60 }
 0x2a3   : > { %v1116_v3 = vmul.f32 %v2394_v60, %v2097_v20  ;;  %v1117_v4 = vmul.f32 %v2394_v60, %v2105_v24  ;;  %1817 = vmatprep.subr.bf16.mxu0 %v1925_v59  ;;  %v1118_v5 = vmul.f32 %v2093_v18, %v2394_v60  ;;  %v1119_v10 = vmul.f32 %v2101_v22, %v2394_v60 }
 0x2a4   : > { %v1133_v12 = vadd.f32 %v2400_v0, %v1112_v62  ;;  %v1134_v16 = vadd.f32 %v2400_v0, %v1113_v63  ;;  %v1135_v42 = vadd.f32 %v2400_v0, %v1114_v1  ;;  %v1136_v14 = vadd.f32 %v2400_v0, %v1115_v2 }
 0x2a5   : > { %v1137_v20 = vadd.f32 %v2400_v0, %v1116_v3  ;;  %v1138_v6 = vadd.f32 %v2400_v0, %v1117_v4  ;;  %v1139_v48 = vadd.f32 %v2400_v0, %v1118_v5  ;;  %v1140_v30 = vadd.f32 %v2400_v0, %v1119_v10 }
 0x2a6   : > { %vm1149_vm15 = vcmp.ge.f32.partialorder %v1133_v12, 0.0  ;;  %vm1150_vm0 = vcmp.ge.f32.partialorder %v1134_v16, 0.0  ;;  %v1165_v24 = vmul.f32 0.01, %v1133_v12  ;;  %v1166_v7 = vmul.f32 0.01, %v1134_v16  ;;  %1818 = vmatpush3.bf16.msra.mxu0 %v1925_v59 }
 0x2a7   : > { %vm1151_vm1 = vcmp.ge.f32.partialorder %v1135_v42, 0.0  ;;  %vm1152_vm2 = vcmp.ge.f32.partialorder %v1136_v14, 0.0  ;;  %v1167_v47 = vmul.f32 0.01, %v1135_v42  ;;  %v1168_v18 = vmul.f32 0.01, %v1136_v14 }
 0x2a8   : > { %v1181_v8 = vsel %vm1149_vm15, %v1133_v12, %v1165_v24  ;;  %v1182_v9 = vsel %vm1150_vm0, %v1134_v16, %v1166_v7  ;;  %vm1153_vm3 = vcmp.ge.f32.partialorder %v1137_v20, 0.0  ;;  %vm1154_vm4 = vcmp.ge.f32.partialorder %v1138_v6, 0.0 }
 0x2a9   : > { %v1197_v22 = vpack.c.bf16 %v1182_v9, %v1181_v8  ;;  %v1183_v26 = vsel %vm1151_vm1, %v1135_v42, %v1167_v47  ;;  %v1184_v27 = vsel %vm1152_vm2, %v1136_v14, %v1168_v18  ;;  %v1169_v46 = vmul.f32 0.01, %v1137_v20  ;;  %v2457_v14 = vld [vmem:[#allocation3] ss:$0 sm:$0xff]  ;;  %v2461_v47 = vld [vmem:[#allocation3 + $0x1] ss:$0 sm:$0xff] }
 0x2aa   : > { %v1198_v28 = vpack.c.bf16 %v1184_v27, %v1183_v26  ;;  %v1170_v29 = vmul.f32 0.01, %v1138_v6  ;;  %v1120_v32 = vmul.f32 %v2394_v60, %v2083_v13  ;;  %v1121_v33 = vmul.f32 %v2394_v60, %v2091_v17 }
 0x2ab   : > { %1819 = vmatprep.mubr.msk.bf16.mxu0 %vm1217_vm14, %v1197_v22  ;;  %v1185_v31 = vsel %vm1153_vm3, %v1137_v20, %v1169_v46  ;;  %v1122_v34 = vmul.f32 %v2079_v11, %v2394_v60  ;;  %vm1155_vm5 = vcmp.ge.f32.partialorder %v1139_v48, 0.0  ;;  %vm1156_vm6 = vcmp.ge.f32.partialorder %v1140_v30, 0.0 }
 0x2ac   : > { %1820 = vmatmul.mubr.msk.bf16.vlgmr.msra.gmra.mxu0 %vm1217_vm14, %v1198_v28  ;;  %v1186_v35 = vsel %vm1154_vm4, %v1138_v6, %v1170_v29  ;;  %v1171_v36 = vmul.f32 0.01, %v1139_v48  ;;  %v1172_v38 = vmul.f32 0.01, %v1140_v30  ;;  %v1141_v39 = vadd.f32 %v2400_v0, %v1120_v32 }
 0x2ad   : > { %v1199_v37 = vpack.c.bf16 %v1186_v35, %v1185_v31  ;;  %v1142_v40 = vadd.f32 %v2400_v0, %v1121_v33  ;;  %v1123_v13 = vmul.f32 %v2087_v15, %v2394_v60  ;;  %v1143_v17 = vadd.f32 %v2400_v0, %v1122_v34 }
 0x2ae   : > { %v1187_v41 = vsel %vm1155_vm5, %v1139_v48, %v1171_v36  ;;  %v1124_v11 = vmul.f32 %v2394_v60, %v2099_v21  ;;  %v1188_v43 = vsel %vm1156_vm6, %v1140_v30, %v1172_v38  ;;  %vm1157_vm8 = vcmp.ge.f32.partialorder %v1141_v39, 0.0 }
 0x2af   : > { %1823 = vmatprep.mubr.msk.bf16.mxu0 %vm1217_vm14, %v1199_v37  ;;  %vm1158_vm9 = vcmp.ge.f32.partialorder %v1142_v40, 0.0  ;;  %v1173_v44 = vmul.f32 0.01, %v1141_v39  ;;  %v1200_v45 = vpack.c.bf16 %v1188_v43, %v1187_v41  ;;  %v1174_v49 = vmul.f32 0.01, %v1142_v40 }
 0x2b0   : > { %v1144_v50 = vadd.f32 %v2400_v0, %v1123_v13  ;;  %vm1159_vm10 = vcmp.ge.f32.partialorder %v1143_v17, 0.0  ;;  %v1175_v52 = vmul.f32 0.01, %v1143_v17  ;;  %v1125_v15 = vmul.f32 %v2394_v60, %v2107_v25 }
 0x2b1   : > { %v1189_v51 = vsel %vm1157_vm8, %v1141_v39, %v1173_v44  ;;  %v1145_v53 = vadd.f32 %v2400_v0, %v1124_v11  ;;  %v1190_v54 = vsel %vm1158_vm9, %v1142_v40, %v1174_v49  ;;  %v1126_v55 = vmul.f32 %v2095_v19, %v2394_v60 }
 0x2b2   : > { %vm1160_vm7 = vcmp.ge.f32.partialorder %v1144_v50, 0.0  ;;  %v1176_v21 = vmul.f32 0.01, %v1144_v50  ;;  %v1201_v56 = vpack.c.bf16 %v1190_v54, %v1189_v51  ;;  %v1146_v57 = vadd.f32 %v2400_v0, %v1125_v15 }
 0x2b3   : > { %vm1161_vm11 = vcmp.ge.f32.partialorder %v1145_v53, 0.0  ;;  %v1191_v58 = vsel %vm1159_vm10, %v1143_v17, %v1175_v52  ;;  %v1177_v59 = vmul.f32 0.01, %v1145_v53  ;;  %v1127_v61 = vmul.f32 %v2103_v23, %v2394_v60 }
 0x2b4   : > { %1824 = vmatmul.mubr.msk.bf16.gmra.mxu0 %vm1217_vm14, %v1200_v45  ;;  %v1192_v25 = vsel %vm1160_vm7, %v1144_v50, %v1176_v21  ;;  %vm1162_vm12 = vcmp.ge.f32.partialorder %v1146_v57, 0.0  ;;  %v1178_v62 = vmul.f32 0.01, %v1146_v57  ;;  %v1147_v63 = vadd.f32 %v2400_v0, %v1126_v55 }
 0x2b5   : > { %1827 = vmatprep.mubr.msk.bf16.mxu0 %vm1217_vm14, %v1201_v56  ;;  %v1193_v1 = vsel %vm1161_vm11, %v1145_v53, %v1177_v59  ;;  %v1148_v19 = vadd.f32 %v2400_v0, %v1127_v61  ;;  %v1202_v3 = vpack.c.bf16 %v1192_v25, %v1191_v58  ;;  %v1926_v0 = vld [vmem:[%s2554_s3] sm:$0x1f]   ;;  %vm1480_vm0 = vcmask 1044480  }
 0x2b6   : > { %v1194_v2 = vsel %vm1162_vm12, %v1146_v57, %v1178_v62  ;;  %v1179_v12 = vmul.f32 0.01, %v1147_v63  ;;  %vm1163_vm13 = vcmp.ge.f32.partialorder %v1147_v63, 0.0  ;;  %1864 = vmatprep.subr.msk.bf16.mxu1 %vm1480_vm0, %v1926_v0  ;;  %v1482_v10 = vsel %vm1480_vm0, %v1926_v0, 0 }
 0x2b7   : > { %v1203_v4 = vpack.c.bf16 %v1194_v2, %v1193_v1  ;;  %v1180_v16 = vmul.f32 0.01, %v1148_v19  ;;  %vm1164_vm15 = vcmp.ge.f32.partialorder %v1148_v19, 0.0  ;;  %1836 = vmatpush3.bf16.msra.mxu1 %v1482_v10  ;;  %vm1455_vm4 = vcmask 80896  }
 0x2b8   : > { %v1195_v23 = vsel %vm1163_vm13, %v1147_v63, %v1179_v12 }
 0x2b9   : > { %v1196_v60 = vsel %vm1164_vm15, %v1148_v19, %v1180_v16 }
 0x2ba   : > { %v1204_v5 = vpack.c.bf16 %v1196_v60, %v1195_v23 }
 0x2bc   : > { %1828 = vmatmul.mubr.msk.bf16.gmra.mxu0 %vm1217_vm14, %v1202_v3 }
 0x2bd   : > { %1831 = vmatprep.mubr.msk.bf16.mxu0 %vm1217_vm14, %v1203_v4 }
 0x2c4   : > { %1832 = vmatmul.mubr.msk.bf16.gmra.mxu0 %vm1217_vm14, %v1204_v5 }
 0x36c   : > { %v1821_v42 = vpop.f32.mrf.mxu0 }
 0x36d   : > { %v1350_v24 = vmul.f32 %v1821_v42, %v2457_v14 }
 0x36e   : > { %v1280_v20 = vpop.f32.mrf.mxu0 }
 0x36f   : > { %v1348_v6 = vmul.f32 %v2457_v14, %v1280_v20  ;;  %v1371_v27 = vadd.f32 %v2461_v47, %v1350_v24 }
 0x370   : > { %v1822_v7 = vpop.f32.mrf.mxu0 }
 0x371   : > { %v1351_v18 = vmul.f32 %v1822_v7, %v2457_v14  ;;  %v1369_v9 = vadd.f32 %v2461_v47, %v1348_v6  ;;  %v1403_v32 = vmul.f32 0.01, %v1371_v27  ;;  %vm1387_vm3 = vcmp.ge.f32.partialorder %v1371_v27, 0.0 }
 0x372   : > { %v1283_v8 = vpop.f32.mrf.mxu0 }
 0x373   : > { %v1372_v22 = vadd.f32 %v2461_v47, %v1351_v18  ;;  %v1349_v26 = vmul.f32 %v2457_v14, %v1283_v8  ;;  %v1401_v31 = vmul.f32 0.01, %v1369_v9  ;;  %vm1385_vm2 = vcmp.ge.f32.partialorder %v1369_v9, 0.0 }
 0x374   : > { %v1825_v46 = vpop.f32.mrf.mxu0  ;;  %v1419_v17 = vsel %vm1387_vm3, %v1371_v27, %v1403_v32 }
 0x375   : > { %v1370_v28 = vadd.f32 %v2461_v47, %v1349_v26  ;;  %v1404_v29 = vmul.f32 0.01, %v1372_v22  ;;  %vm1388_vm14 = vcmp.ge.f32.partialorder %v1372_v22, 0.0  ;;  %v1354_v33 = vmul.f32 %v1825_v46, %v2457_v14 }
 0x376   : > { %v1296_v48 = vpop.f32.mrf.mxu0  ;;  %v1417_v13 = vsel %vm1385_vm2, %v1369_v9, %v1401_v31 }
 0x377   : > { %v1352_v30 = vmul.f32 %v2457_v14, %v1296_v48  ;;  %vm1386_vm1 = vcmp.ge.f32.partialorder %v1370_v28, 0.0  ;;  %v1402_v35 = vmul.f32 0.01, %v1370_v28  ;;  %v1420_v37 = vsel %vm1388_vm14, %v1372_v22, %v1404_v29 }
 0x378   : > { %v1826_v34 = vpop.f32.mrf.mxu0  ;;  %v1375_v11 = vadd.f32 %v2461_v47, %v1354_v33  ;;  %v1434_v49 = vpack.c.bf16 %v1420_v37, %v1419_v17 }
 0x379   : > { %v1355_v36 = vmul.f32 %v1826_v34, %v2457_v14  ;;  %v1418_v39 = vsel %vm1386_vm1, %v1370_v28, %v1402_v35  ;;  %v1373_v40 = vadd.f32 %v2461_v47, %v1352_v30  ;;  %vm1581_vm1 = vcmask 15360  }
 0x37a   : > { %v1299_v38 = vpop.f32.mrf.mxu0  ;;  %v1433_v45 = vpack.c.bf16 %v1418_v39, %v1417_v13  ;;  %v1407_v21 = vmul.f32 0.01, %v1375_v11  ;;  %vm1391_vm9 = vcmp.ge.f32.partialorder %v1375_v11, 0.0  ;;  %v1724_v39 = vld [vmem:[%s2557_s6] ss:$0 sm:$0xff] }
 0x37b   : > { %v1376_v41 = vadd.f32 %v2461_v47, %v1355_v36  ;;  %v1353_v43 = vmul.f32 %v2457_v14, %v1299_v38  ;;  %v1405_v15 = vmul.f32 0.01, %v1373_v40  ;;  %vm1389_vm6 = vcmp.ge.f32.partialorder %v1373_v40, 0.0 }
 0x37c   : > { %v1829_v44 = vpop.f32.mrf.mxu0  ;;  %1837 = vmatprep.mubr.msk.bf16.mxu1 %vm1455_vm4, %v1433_v45  ;;  %v1423_v19 = vsel %vm1391_vm9, %v1375_v11, %v1407_v21 }
 0x37d   : > { %v1408_v50 = vmul.f32 0.01, %v1376_v41  ;;  %v1374_v51 = vadd.f32 %v2461_v47, %v1353_v43  ;;  %vm1392_vm5 = vcmp.ge.f32.partialorder %v1376_v41, 0.0  ;;  %v1358_v53 = vmul.f32 %v1829_v44, %v2457_v14  ;;  %1838 = vmatmul.mubr.msk.bf16.vlgmr.msra.gmra.mxu1 %vm1455_vm4, %v1434_v49 }
 0x37e   : > { %v1312_v52 = vpop.f32.mrf.mxu0  ;;  %v1421_v25 = vsel %vm1389_vm6, %v1373_v40, %v1405_v15 }
 0x37f   : > { %v1356_v54 = vmul.f32 %v2457_v14, %v1312_v52  ;;  %vm1390_vm8 = vcmp.ge.f32.partialorder %v1374_v51, 0.0  ;;  %v1406_v55 = vmul.f32 0.01, %v1374_v51  ;;  %v1424_v58 = vsel %vm1392_vm5, %v1376_v41, %v1408_v50 }
 0x380   : > { %v1830_v56 = vpop.f32.mrf.mxu0  ;;  %v1379_v62 = vadd.f32 %v2461_v47, %v1358_v53  ;;  %v1436_v12 = vpack.c.bf16 %v1424_v58, %v1423_v19 }
 0x381   : > { %v1359_v57 = vmul.f32 %v1830_v56, %v2457_v14  ;;  %v1422_v59 = vsel %vm1390_vm8, %v1374_v51, %v1406_v55  ;;  %v1377_v63 = vadd.f32 %v2461_v47, %v1356_v54 }
 0x382   : > { %v1315_v61 = vpop.f32.mrf.mxu0  ;;  %v1435_v4 = vpack.c.bf16 %v1422_v59, %v1421_v25  ;;  %v1411_v5 = vmul.f32 0.01, %v1379_v62  ;;  %vm1395_vm12 = vcmp.ge.f32.partialorder %v1379_v62, 0.0 }
 0x383   : > { %v1380_v1 = vadd.f32 %v2461_v47, %v1359_v57  ;;  %v1357_v2 = vmul.f32 %v2457_v14, %v1315_v61  ;;  %v1409_v0 = vmul.f32 0.01, %v1377_v63  ;;  %vm1393_vm7 = vcmp.ge.f32.partialorder %v1377_v63, 0.0 }
 0x384   : > { %v1833_v3 = vpop.f32.mrf.mxu0  ;;  %1841 = vmatprep.mubr.msk.bf16.mxu1 %vm1455_vm4, %v1435_v4  ;;  %v1427_v27 = vsel %vm1395_vm12, %v1379_v62, %v1411_v5 }
 0x385   : > { %v1412_v16 = vmul.f32 0.01, %v1380_v1  ;;  %v1378_v23 = vadd.f32 %v2461_v47, %v1357_v2  ;;  %vm1396_vm10 = vcmp.ge.f32.partialorder %v1380_v1, 0.0  ;;  %1842 = vmatmul.mubr.msk.bf16.gmra.mxu1 %vm1455_vm4, %v1436_v12  ;;  %v1362_v20 = vmul.f32 %v1833_v3, %v2457_v14 }
 0x386   : > { %v1328_v60 = vpop.f32.mrf.mxu0  ;;  %v1425_v22 = vsel %vm1393_vm7, %v1377_v63, %v1409_v0 }
 0x387   : > { %v1360_v10 = vmul.f32 %v2457_v14, %v1328_v60  ;;  %vm1394_vm11 = vcmp.ge.f32.partialorder %v1378_v23, 0.0  ;;  %v1410_v42 = vmul.f32 0.01, %v1378_v23  ;;  %v1428_v7 = vsel %vm1396_vm10, %v1380_v1, %v1412_v16 }
 0x388   : > { %v1834_v6 = vpop.f32.mrf.mxu0  ;;  %v1383_v46 = vadd.f32 %v2461_v47, %v1362_v20  ;;  %v1438_v48 = vpack.c.bf16 %v1428_v7, %v1427_v27 }
 0x389   : > { %v1363_v24 = vmul.f32 %v1834_v6, %v2457_v14  ;;  %v1426_v18 = vsel %vm1394_vm11, %v1378_v23, %v1410_v42  ;;  %v1381_v8 = vadd.f32 %v2461_v47, %v1360_v10 }
 0x38a   : > { %v1331_v9 = vpop.f32.mrf.mxu0  ;;  %v1437_v29 = vpack.c.bf16 %v1426_v18, %v1425_v22  ;;  %v1415_v33 = vmul.f32 0.01, %v1383_v46  ;;  %vm1399_vm14 = vcmp.ge.f32.partialorder %v1383_v46, 0.0 }
 0x38b   : > { %v1384_v26 = vadd.f32 %v2461_v47, %v1363_v24  ;;  %v1361_v28 = vmul.f32 %v2457_v14, %v1331_v9  ;;  %v1413_v30 = vmul.f32 0.01, %v1381_v8  ;;  %vm1397_vm13 = vcmp.ge.f32.partialorder %v1381_v8, 0.0 }
 0x38c   : > { %1845 = vmatprep.mubr.msk.bf16.mxu1 %vm1455_vm4, %v1437_v29  ;;  %v1431_v38 = vsel %vm1399_vm14, %v1383_v46, %v1415_v33 }
 0x38d   : > { %v1416_v31 = vmul.f32 0.01, %v1384_v26  ;;  %v1382_v32 = vadd.f32 %v2461_v47, %v1361_v28  ;;  %vm1400_vm15 = vcmp.ge.f32.partialorder %v1384_v26, 0.0  ;;  %1846 = vmatmul.mubr.msk.bf16.gmra.mxu1 %vm1455_vm4, %v1438_v48  ;;  %v1429_v35 = vsel %vm1397_vm13, %v1381_v8, %v1413_v30 }
 0x38f   : > { %vm1398_vm0 = vcmp.ge.f32.partialorder %v1382_v32, 0.0  ;;  %v1414_v34 = vmul.f32 0.01, %v1382_v32  ;;  %v1432_v14 = vsel %vm1400_vm15, %v1384_v26, %v1416_v31 }
 0x390   : > { %v1440_v47 = vpack.c.bf16 %v1432_v14, %v1431_v38 }
 0x391   : > { %v1430_v36 = vsel %vm1398_vm0, %v1382_v32, %v1414_v34 }
 0x392   : > { %v1439_v37 = vpack.c.bf16 %v1430_v36, %v1429_v35 }
 0x394   : > { %1849 = vmatprep.mubr.msk.bf16.mxu1 %vm1455_vm4, %v1439_v37 }
 0x395   : > { %1850 = vmatmul.mubr.msk.bf16.gmra.mxu1 %vm1455_vm4, %v1440_v47 }
 0x43d   : > { %v1839_v40 = vpop.f32.mrf.mxu1 }
 0x43e   : > { %v1527_v41 = vadd.f32 %v1839_v40, %v1724_v39 }
 0x43f   : > { %v1518_v13 = vpop.f32.mrf.mxu1 }
 0x440   : > { %1584 = vst.msk [vmem:[%s2057_s20 + $0x10] sm:$0xff] %vm1581_vm1, %v1527_v41  ;;  %v1519_v17 = vadd.f32 %v1724_v39, %v1518_v13 }
 0x441   : > { %v1840_v11 = vpop.f32.mrf.mxu1 }
 0x442   : > { %1582 = vst.msk [vmem:[%s2057_s20] sm:$0xff] %vm1581_vm1, %v1519_v17  ;;  %v1530_v43 = vadd.f32 %v1840_v11, %v1724_v39 }
 0x443   : > { %v1521_v44 = vpop.f32.mrf.mxu1 }
 0x444   : > { %1585 = vst.msk [vmem:[%s2057_s20 + $0x18] sm:$0xff] %vm1581_vm1, %v1530_v43  ;;  %v1522_v45 = vadd.f32 %v1724_v39, %v1521_v44 }
 0x445   : > { %v1843_v49 = vpop.f32.mrf.mxu1 }
 0x446   : > { %1583 = vst.msk [vmem:[%s2057_s20 + $0x8] sm:$0xff] %vm1581_vm1, %v1522_v45  ;;  %v1543_v50 = vadd.f32 %v1843_v49, %v1724_v39 }
 0x447   : > { %v1534_v51 = vpop.f32.mrf.mxu1 }
 0x448   : > { %1588 = vst.msk [vmem:[%s2057_s20 + $0x30] sm:$0xff] %vm1581_vm1, %v1543_v50  ;;  %v1535_v52 = vadd.f32 %v1724_v39, %v1534_v51 }
 0x449   : > { %v1844_v15 = vpop.f32.mrf.mxu1 }
 0x44a   : > { %1586 = vst.msk [vmem:[%s2057_s20 + $0x20] sm:$0xff] %vm1581_vm1, %v1535_v52  ;;  %v1546_v53 = vadd.f32 %v1844_v15, %v1724_v39 }
 0x44b   : > { %v1537_v54 = vpop.f32.mrf.mxu1 }
 0x44c   : > { %1589 = vst.msk [vmem:[%s2057_s20 + $0x38] sm:$0xff] %vm1581_vm1, %v1546_v53  ;;  %v1538_v21 = vadd.f32 %v1724_v39, %v1537_v54 }
 0x44d   : > { %v1847_v55 = vpop.f32.mrf.mxu1 }
 0x44e   : > { %1587 = vst.msk [vmem:[%s2057_s20 + $0x28] sm:$0xff] %vm1581_vm1, %v1538_v21  ;;  %v1559_v56 = vadd.f32 %v1847_v55, %v1724_v39 }
 0x44f   : > { %v1550_v57 = vpop.f32.mrf.mxu1 }
 0x450   : > { %1592 = vst.msk [vmem:[%s2057_s20 + $0x50] sm:$0xff] %vm1581_vm1, %v1559_v56  ;;  %v1551_v58 = vadd.f32 %v1724_v39, %v1550_v57 }
 0x451   : > { %v1848_v59 = vpop.f32.mrf.mxu1 }
 0x452   : > { %1590 = vst.msk [vmem:[%s2057_s20 + $0x40] sm:$0xff] %vm1581_vm1, %v1551_v58  ;;  %v1562_v61 = vadd.f32 %v1848_v59, %v1724_v39 }
 0x453   : > { %v1553_v25 = vpop.f32.mrf.mxu1 }
 0x454   : > { %1593 = vst.msk [vmem:[%s2057_s20 + $0x58] sm:$0xff] %vm1581_vm1, %v1562_v61  ;;  %v1554_v62 = vadd.f32 %v1724_v39, %v1553_v25 }
 0x455   : > { %v1851_v63 = vpop.f32.mrf.mxu1 }
 0x456   : > { %1591 = vst.msk [vmem:[%s2057_s20 + $0x48] sm:$0xff] %vm1581_vm1, %v1554_v62  ;;  %v1575_v1 = vadd.f32 %v1851_v63, %v1724_v39 }
 0x457   : > { %v1566_v19 = vpop.f32.mrf.mxu1 }
 0x458   : > { %1596 = vst.msk [vmem:[%s2057_s20 + $0x70] sm:$0xff] %vm1581_vm1, %v1575_v1  ;;  %v1567_v2 = vadd.f32 %v1724_v39, %v1566_v19 }
 0x459   : > { %v1852_v3 = vpop.f32.mrf.mxu1 }
 0x45a   : > { %1594 = vst.msk [vmem:[%s2057_s20 + $0x60] sm:$0xff] %vm1581_vm1, %v1567_v2  ;;  %v1578_v4 = vadd.f32 %v1852_v3, %v1724_v39 }
 0x45b   : > { %v1569_v12 = vpop.f32.mrf.mxu1 }
 0x45c   : > { %1597 = vst.msk [vmem:[%s2057_s20 + $0x78] sm:$0xff] %vm1581_vm1, %v1578_v4  ;;  %v1570_v16 = vadd.f32 %v1724_v39, %v1569_v12 }
 0x45e   : > { %1595 = vst.msk [vmem:[%s2057_s20 + $0x68] sm:$0xff] %vm1581_vm1, %v1570_v16 }
 0x45f PF: > { %s17_s28 = sadd.s32 1, %s1965_s28   ;;  %s2560_s24 = smov %s1957_s26 }
 0x460   : > { %p14_p4 = scmp.ge.s32.totalorder %s17_s28, 8   ;;  %s2561_s25 = smov %s1961_s27 }
 0x461   : > { %s2562_s26 = smov %s2565_s29  ;;  %s2563_s27 = smov %s2569_s30 }
 0x462   :  { %16 = sbr.rel (!%p14_p4) target bundleno = 3 (0x3), region = 110 }

</bundles_post_ra>
